<compile_context>
chip_gen: v5e
topology: v5e:2x2
jax: 0.10.0
libtpu: 0.0.40
codegen_flags: <defaults>
</compile_context>

<pallas_src>
import functools
import math

import jax
import jax.numpy as jnp
from jax.experimental import pallas as pl
from jax.experimental.pallas import tpu as pltpu


# ----------------------------- in-kernel helpers -----------------------------

def _gelu(x):
    # tanh-approximate GELU (see TODO above).
    c = math.sqrt(2.0 / math.pi)
    return 0.5 * x * (1.0 + jnp.tanh(c * (x + 0.044715 * x * x * x)))


def _layernorm(x, g, b, eps=1e-5):
    mu = jnp.mean(x, axis=-1, keepdims=True)
    var = jnp.mean((x - mu) ** 2, axis=-1, keepdims=True)
    return (x - mu) * jax.lax.rsqrt(var + eps) * g + b


def _vmem_limit_bytes():
    """Generation-aware scoped-VMEM limit (75% of physical, capped at 100 MiB)."""
    cap = 64 * 1024 * 1024
    try:
        detected = int(pltpu.get_tpu_info().vmem_capacity_bytes)
        if detected >= 16 * 1024 * 1024:
            cap = detected
    except Exception:
        pass
    return int(min(cap * 3 // 4, 100 * 1024 * 1024))


# --------------------------------- kernels -----------------------------------

def encoder_kernel(x_ref, mask_ref, eg_ref, eb_ref,
                   wq_ref, bq_ref, wk_ref, bk_ref, wv_ref, bv_ref,
                   wo_ref, bo_ref, ln1g_ref, ln1b_ref,
                   wi_ref, bi_ref, wo2_ref, bo2_ref, ln2g_ref, ln2b_ref,
                   cls_ref, carry_ref, ctx_ref, *, num_heads):
    """One (batch block, encoder layer) grid step of a post-LN transformer.

    Grid = (num_batch_blocks, L); batch-block axis is 'parallel', layer axis is
    'arbitrary'.  carry_ref (Bb*S, H) f32 holds the activation across the layer
    axis; ctx_ref (Bb*S, H) bf16 stages the per-head attention context.  Layer
    weights are streamed once per layer (amortized over the batch block); only
    the [CLS] rows are written to HBM at the last layer.
    """
    l = pl.program_id(1)
    Bb, _, S = mask_ref.shape
    M, H = carry_ref.shape                              # M = Bb * S
    hd = H // num_heads
    scale = 1.0 / math.sqrt(hd)

    # Layer 0: load bf16 embeddings and apply the embedding LayerNorm in f32.
    @pl.when(l == 0)
    def _():
        carry_ref[...] = _layernorm(x_ref[...].astype(jnp.float32),
                                    eg_ref[...], eb_ref[...])

    x = carry_ref[...]                                  # (M, H) f32 residual stream
    xb = x.astype(jnp.bfloat16)

    # QKV projections over the flattened (Bb*S, H) block: bf16 operands, f32
    # accumulation + f32 bias.  1/sqrt(hd) folded into q once.
    q = jnp.dot(xb, wq_ref[...], preferred_element_type=jnp.float32) + bq_ref[...]
    k = jnp.dot(xb, wk_ref[...], preferred_element_type=jnp.float32) + bk_ref[...]
    v = jnp.dot(xb, wv_ref[...], preferred_element_type=jnp.float32) + bv_ref[...]
    q = q * scale
    vb = v.astype(jnp.bfloat16)

    # Group heads into <=128-lane strips so ctx stores are lane-dense.
    heads_per_group = max(1, min(num_heads, 128 // hd)) if hd < 128 else 1
    while num_heads % heads_per_group:
        heads_per_group -= 1
    num_groups = num_heads // heads_per_group
    dims = (((1,), (1,)), ((), ()))                     # contract last dims (no .T)

    for b in range(Bb):
        r0 = b * S
        qb = q[r0:r0 + S, :]                            # (S, H) f32
        kb = k[r0:r0 + S, :]
        vbb = vb[r0:r0 + S, :]                          # (S, H) bf16
        mb = mask_ref[b]                                # (1, S) additive mask
        for g in range(num_groups):
            pieces = []
            for hh in range(heads_per_group):
                lo = (g * heads_per_group + hh) * hd
                s = jax.lax.dot_general(qb[:, lo:lo + hd], kb[:, lo:lo + hd],
                                        dims, preferred_element_type=jnp.float32)
                s = s + mb                              # implicit sublane broadcast
                s = s - jnp.max(s, axis=-1, keepdims=True)
                p = jnp.exp(s)
                p = p * pl.reciprocal(jnp.sum(p, axis=-1, keepdims=True),
                                      approx=True)
                pieces.append(jnp.dot(p.astype(jnp.bfloat16), vbb[:, lo:lo + hd],
                                      preferred_element_type=jnp.float32))
            strip = pieces[0] if len(pieces) == 1 else jnp.concatenate(pieces,
                                                                       axis=-1)
            c0 = g * heads_per_group * hd
            ctx_ref[r0:r0 + S, c0:c0 + heads_per_group * hd] = (
                strip.astype(jnp.bfloat16))

    # Output projection reads the bf16 ctx scratch directly (no cast).
    attn = jnp.dot(ctx_ref[...], wo_ref[...],
                   preferred_element_type=jnp.float32) + bo_ref[...]
    h1 = _layernorm(x + attn, ln1g_ref[...], ln1b_ref[...])

    ffh = _gelu(jnp.dot(h1.astype(jnp.bfloat16), wi_ref[...],
                        preferred_element_type=jnp.float32) + bi_ref[...])
    ff = jnp.dot(ffh.astype(jnp.bfloat16), wo2_ref[...],
                 preferred_element_type=jnp.float32) + bo2_ref[...]
    out = _layernorm(h1 + ff, ln2g_ref[...], ln2b_ref[...])
    carry_ref[...] = out

    # Only last_hidden_state[:, 0] (one row per batch item) is needed downstream.
    @pl.when(l == pl.num_programs(1) - 1)
    def _():
        for b in range(Bb):
            cls_ref[b:b + 1, :] = out[b * S:b * S + 1, :]


def tail_kernel(cls_ref, feat_ref,
                fw1_ref, fb1_ref, fg1_ref, fbb1_ref,
                fw2_ref, fb2_ref, fg2_ref, fbb2_ref,
                cw1_ref, cb1_ref, cg1_ref, cbb1_ref,
                cw2_ref, cb2_ref, o_ref):
    """feature_encoder + fusion + classifier fused into one kernel."""
    # feature_encoder: Linear(F,256), LN, GELU, [Dropout], Linear(256,H), LN, GELU
    x = feat_ref[...]                                   # (B, F)
    w1 = fw1_ref[...]                                   # (F, 256) f32
    nb, nf = x.shape
    # Unrolled rank-1 accumulation avoids a tiny-K (K=num_features) MXU matmul.
    h = jnp.zeros((nb, w1.shape[1]), jnp.float32) + fb1_ref[...]
    for f in range(nf):
        h = h + x[:, f:f + 1] * w1[f:f + 1, :]
    h = _gelu(_layernorm(h, fg1_ref[...], fbb1_ref[...]))
    h = jnp.dot(h.astype(jnp.bfloat16), fw2_ref[...],
                preferred_element_type=jnp.float32) + fb2_ref[...]
    feat_enc = _gelu(_layernorm(h, fg2_ref[...], fbb2_ref[...]))

    # fused = cls + feat ; classifier = Linear(H,H), LN, GELU, [Dropout], Linear(H,1)
    fused = cls_ref[...] + feat_enc                     # (B, H) f32
    h = jnp.dot(fused.astype(jnp.bfloat16), cw1_ref[...],
                preferred_element_type=jnp.float32) + cb1_ref[...]
    h = _gelu(_layernorm(h, cg1_ref[...], cbb1_ref[...]))
    # Final Linear(H, 1) as VPU multiply + lane reduce (avoids lane-sparse matmul).
    o_ref[...] = jnp.sum(h * cw2_ref[...], axis=-1, keepdims=True) + cb2_ref[...]


# ------------------------------- model wrapper --------------------------------

def init_params(key, *, vocab, types, max_len, hidden, num_layers, ffn,
                num_features, feat_hidden):
    def split():
        nonlocal key
        key, sub = jax.random.split(key)
        return sub

    def ln(d):
        return jnp.ones((1, d), jnp.float32), jnp.zeros((1, d), jnp.float32)

    def stacked_w(din, dout):
        return 0.02 * jax.random.normal(split(), (num_layers, din, dout), jnp.float32)

    def stacked_b(dout):
        return jnp.zeros((num_layers, 1, dout), jnp.float32)

    def stacked_ln(d):
        return (jnp.ones((num_layers, 1, d), jnp.float32),
                jnp.zeros((num_layers, 1, d), jnp.float32))

    bf16 = jnp.bfloat16
    emb_g, emb_b = ln(hidden)
    ln1g, ln1b = stacked_ln(hidden)
    ln2g, ln2b = stacked_ln(hidden)

    fw1 = 0.02 * jax.random.normal(split(), (num_features, feat_hidden), jnp.float32)
    fb1 = jnp.zeros((1, feat_hidden), jnp.float32)
    fg1, fbb1 = ln(feat_hidden)
    fw2 = (0.02 * jax.random.normal(split(), (feat_hidden, hidden), jnp.float32)).astype(bf16)
    fb2 = jnp.zeros((1, hidden), jnp.float32)
    fg2, fbb2 = ln(hidden)

    cw1 = (0.02 * jax.random.normal(split(), (hidden, hidden), jnp.float32)).astype(bf16)
    cb1 = jnp.zeros((1, hidden), jnp.float32)
    cg1, cbb1 = ln(hidden)
    cw2 = 0.02 * jax.random.normal(split(), (1, hidden), jnp.float32)   # Linear(H,1) weight row
    cb2 = jnp.zeros((1, 1), jnp.float32)

    return {
        "word_emb": 0.02 * jax.random.normal(split(), (vocab, hidden), jnp.float32),
        "pos_emb": 0.02 * jax.random.normal(split(), (max_len, hidden), jnp.float32),
        "type_emb": 0.02 * jax.random.normal(split(), (types, hidden), jnp.float32),
        "emb_ln_g": emb_g, "emb_ln_b": emb_b,
        # stacked per-layer encoder weights (leading layer axis); matmul weights bf16
        "Wq": stacked_w(hidden, hidden).astype(bf16), "bq": stacked_b(hidden),
        "Wk": stacked_w(hidden, hidden).astype(bf16), "bk": stacked_b(hidden),
        "Wv": stacked_w(hidden, hidden).astype(bf16), "bv": stacked_b(hidden),
        "Wo": stacked_w(hidden, hidden).astype(bf16), "bo": stacked_b(hidden),
        "ln1g": ln1g, "ln1b": ln1b,
        "Wi": stacked_w(hidden, ffn).astype(bf16), "bi": stacked_b(ffn),
        "Wo2": stacked_w(ffn, hidden).astype(bf16), "bo2": stacked_b(hidden),
        "ln2g": ln2g, "ln2b": ln2b,
        # feature encoder + classifier
        "fw1": fw1, "fb1": fb1, "fg1": fg1, "fbb1": fbb1,
        "fw2": fw2, "fb2": fb2, "fg2": fg2, "fbb2": fbb2,
        "cw1": cw1, "cb1": cb1, "cg1": cg1, "cbb1": cbb1,
        "cw2": cw2, "cb2": cb2,
    }


_LAYER_KEYS = ("Wq", "bq", "Wk", "bk", "Wv", "bv", "Wo", "bo",
               "ln1g", "ln1b", "Wi", "bi", "Wo2", "bo2", "ln2g", "ln2b")


def automodel_multimodal_forward(params, input_ids, additional_features,
                                 attention_mask, token_type_ids, *, num_heads,
                                 batch_block=None):
    B, S = input_ids.shape
    L, H, _ = params["Wq"].shape
    FFN = params["Wi"].shape[2]
    if batch_block is None:
        batch_block = B                 # whole batch per block: weights stream once/layer
    assert B % batch_block == 0
    nblk = B // batch_block

    # --- backbone embeddings (glue: table gathers); bf16 into the kernel ---
    emb = (params["word_emb"][input_ids]
           + params["pos_emb"][None, :S, :]
           + params["type_emb"][token_type_ids]).astype(jnp.bfloat16)
    emb = emb.reshape(B * S, H)

    # Additive key-padding mask: 0 keep / -1e9 pad, shape (B, 1, S).
    add_mask = ((attention_mask.astype(jnp.float32) - 1.0) * 1e9)[:, None, :]

    # --- encoder: single pallas_call, grid = (batch_block, layer) ---
    layer_args = [params[k] for k in _LAYER_KEYS]

    def _stacked_spec(arr):
        nd = arr.ndim - 1
        return pl.BlockSpec((None,) + arr.shape[1:],
                            lambda i, l, _nd=nd: (l,) + (0,) * _nd)

    in_specs = [
        pl.BlockSpec((batch_block * S, H), lambda i, l: (i, 0)),    # embeddings (bf16)
        pl.BlockSpec((batch_block, 1, S), lambda i, l: (i, 0, 0)),  # additive mask
        pl.BlockSpec((1, H), lambda i, l: (0, 0)),                  # emb LN gamma
        pl.BlockSpec((1, H), lambda i, l: (0, 0)),                  # emb LN beta
    ] + [_stacked_spec(a) for a in layer_args]

    enc_flops = int(2 * B * L * (4 * S * H * H + 2 * S * S * H + 2 * S * H * FFN))
    enc_trans = int(B * L * (num_heads * S * S + S * FFN))
    enc_bytes = int(2 * L * (4 * H * H + 2 * H * FFN)       # bf16 weights once/layer
                    + B * S * H * 2 + B * H * 4 + B * S * 4)
    enc_cost = pl.CostEstimate(flops=enc_flops, transcendentals=enc_trans,
                               bytes_accessed=enc_bytes)

    cls = pl.pallas_call(
        functools.partial(encoder_kernel, num_heads=num_heads),
        out_shape=jax.ShapeDtypeStruct((B, H), jnp.float32),
        grid_spec=pltpu.PrefetchScalarGridSpec(
            num_scalar_prefetch=0,
            grid=(nblk, L),
            in_specs=in_specs,
            out_specs=pl.BlockSpec((batch_block, H), lambda i, l: (i, 0)),
            scratch_shapes=[pltpu.VMEM((batch_block * S, H), jnp.float32),   # carry
                            pltpu.VMEM((batch_block * S, H), jnp.bfloat16)]),  # ctx
        compiler_params=pltpu.CompilerParams(
            dimension_semantics=("parallel", "arbitrary"),
            vmem_limit_bytes=_vmem_limit_bytes()),
        cost_estimate=enc_cost,
    )(emb, add_mask, params["emb_ln_g"], params["emb_ln_b"], *layer_args)

    # --- feature encoder + fuse + classifier (single fused Pallas kernel) ---
    NF = additional_features.shape[1]
    FH = params["fw1"].shape[1]
    tail_cost = pl.CostEstimate(
        flops=int(2 * B * (NF * FH + FH * H + H * H + H)),
        transcendentals=int(B * (FH + 2 * H)),
        bytes_accessed=int(4 * (NF * FH + FH * H + H * H + H)
                           + B * (H + NF + 1) * 4))
    tail_args = (cls, additional_features.astype(jnp.float32),
                 params["fw1"], params["fb1"], params["fg1"], params["fbb1"],
                 params["fw2"], params["fb2"], params["fg2"], params["fbb2"],
                 params["cw1"], params["cb1"], params["cg1"], params["cbb1"],
                 params["cw2"], params["cb2"])
    vmem = pl.BlockSpec(memory_space=pltpu.MemorySpace.VMEM)
    logits = pl.pallas_call(
        tail_kernel,
        out_shape=jax.ShapeDtypeStruct((B, 1), jnp.float32),
        in_specs=[vmem] * len(tail_args),
        out_specs=vmem,
        cost_estimate=tail_cost,
    )(*tail_args)

    return logits[:, 0]                                        # == logits.squeeze(1)


# ----------------------------------- main -------------------------------------

if __name__ == "__main__":
    B, S = 2, 8                   # batch, sequence length (MAX_LEN stand-in)
    VOCAB, TYPES = 100, 2
    H, NH, L, FFN = 32, 4, 2, 64  # small stand-in for mdeberta-v3-base (768/12/12)
    NUM_FEATURES, FEAT_HIDDEN = 3, 256

    root = jax.random.PRNGKey(0)
    k_par, k_ids, k_feat = jax.random.split(root, 3)

    params = init_params(k_par, vocab=VOCAB, types=TYPES, max_len=S,
                         hidden=H, num_layers=L, ffn=FFN,
                         num_features=NUM_FEATURES, feat_hidden=FEAT_HIDDEN)

    input_ids = jax.random.randint(k_ids, (B, S), 0, VOCAB, dtype=jnp.int32)
    additional_features = jax.random.normal(k_feat, (B, NUM_FEATURES), jnp.float32)
    attention_mask = jnp.array([[1] * S, [1] * (S - 2) + [0] * 2], dtype=jnp.int32)
    token_type_ids = jnp.zeros((B, S), dtype=jnp.int32)

    fwd = jax.jit(functools.partial(automodel_multimodal_forward, num_heads=NH))
    logits = fwd(params, input_ids, additional_features, attention_mask,
                 token_type_ids)
    logits = jax.block_until_ready(logits)

    assert logits.shape == (B,), logits.shape
    assert logits.dtype == jnp.float32
    assert bool(jnp.all(jnp.isfinite(logits)))
    print("KERNEL_OK")
</pallas_src>

<mosaic_0001>
module attributes {stable_mosaic.version = 11 : i64} {
  func.func @tail_kernel(%arg0: memref<2x32xf32, #tpu.memory_space<vmem>>, %arg1: memref<2x3xf32, #tpu.memory_space<vmem>>, %arg2: memref<3x256xf32, #tpu.memory_space<vmem>>, %arg3: memref<1x256xf32, #tpu.memory_space<vmem>>, %arg4: memref<1x256xf32, #tpu.memory_space<vmem>>, %arg5: memref<1x256xf32, #tpu.memory_space<vmem>>, %arg6: memref<256x32xbf16, #tpu.memory_space<vmem>>, %arg7: memref<1x32xf32, #tpu.memory_space<vmem>>, %arg8: memref<1x32xf32, #tpu.memory_space<vmem>>, %arg9: memref<1x32xf32, #tpu.memory_space<vmem>>, %arg10: memref<32x32xbf16, #tpu.memory_space<vmem>>, %arg11: memref<1x32xf32, #tpu.memory_space<vmem>>, %arg12: memref<1x32xf32, #tpu.memory_space<vmem>>, %arg13: memref<1x32xf32, #tpu.memory_space<vmem>>, %arg14: memref<1x32xf32, #tpu.memory_space<vmem>>, %arg15: memref<1x1xf32, #tpu.memory_space<vmem>>, %arg16: memref<2x1xf32, #tpu.memory_space<vmem>>) attributes {dimension_semantics = [], scalar_prefetch = 0 : i64, scratch_operands = 0 : i64, tpu.core_type = #tpu.core_type<tc>} {
    %c0 = arith.constant 0 : index
    %c0_0 = arith.constant 0 : index
    %0 = vector.load %arg1[%c0, %c0_0] : memref<2x3xf32, #tpu.memory_space<vmem>>, vector<2x3xf32>
    %c0_1 = arith.constant 0 : index
    %c0_2 = arith.constant 0 : index
    %1 = vector.load %arg2[%c0_1, %c0_2] : memref<3x256xf32, #tpu.memory_space<vmem>>, vector<3x256xf32>
    %cst = arith.constant 0.000000e+00 : f32
    %2 = vector.broadcast %cst : f32 to vector<2x256xf32>
    %c0_3 = arith.constant 0 : index
    %c0_4 = arith.constant 0 : index
    %3 = vector.load %arg3[%c0_3, %c0_4] : memref<1x256xf32, #tpu.memory_space<vmem>>, vector<1x256xf32>
    %4 = vector.broadcast %3 : vector<1x256xf32> to vector<2x256xf32>
    %5 = arith.addf %2, %4 : vector<2x256xf32>
    %6 = vector.extract_strided_slice %0 {offsets = [0, 0], sizes = [2, 1], strides = [1, 1]} : vector<2x3xf32> to vector<2x1xf32>
    %7 = vector.extract_strided_slice %1 {offsets = [0, 0], sizes = [1, 256], strides = [1, 1]} : vector<3x256xf32> to vector<1x256xf32>
    %8 = vector.broadcast %6 : vector<2x1xf32> to vector<2x256xf32>
    %9 = vector.broadcast %7 : vector<1x256xf32> to vector<2x256xf32>
    %10 = arith.mulf %8, %9 : vector<2x256xf32>
    %11 = arith.addf %5, %10 : vector<2x256xf32>
    %12 = vector.extract_strided_slice %0 {offsets = [0, 1], sizes = [2, 1], strides = [1, 1]} : vector<2x3xf32> to vector<2x1xf32>
    %13 = vector.extract_strided_slice %1 {offsets = [1, 0], sizes = [1, 256], strides = [1, 1]} : vector<3x256xf32> to vector<1x256xf32>
    %14 = vector.broadcast %12 : vector<2x1xf32> to vector<2x256xf32>
    %15 = vector.broadcast %13 : vector<1x256xf32> to vector<2x256xf32>
    %16 = arith.mulf %14, %15 : vector<2x256xf32>
    %17 = arith.addf %11, %16 : vector<2x256xf32>
    %18 = vector.extract_strided_slice %0 {offsets = [0, 2], sizes = [2, 1], strides = [1, 1]} : vector<2x3xf32> to vector<2x1xf32>
    %19 = vector.extract_strided_slice %1 {offsets = [2, 0], sizes = [1, 256], strides = [1, 1]} : vector<3x256xf32> to vector<1x256xf32>
    %20 = vector.broadcast %18 : vector<2x1xf32> to vector<2x256xf32>
    %21 = vector.broadcast %19 : vector<1x256xf32> to vector<2x256xf32>
    %22 = arith.mulf %20, %21 : vector<2x256xf32>
    %23 = arith.addf %17, %22 : vector<2x256xf32>
    %c0_5 = arith.constant 0 : index
    %c0_6 = arith.constant 0 : index
    %24 = vector.load %arg4[%c0_5, %c0_6] : memref<1x256xf32, #tpu.memory_space<vmem>>, vector<1x256xf32>
    %c0_7 = arith.constant 0 : index
    %c0_8 = arith.constant 0 : index
    %25 = vector.load %arg5[%c0_7, %c0_8] : memref<1x256xf32, #tpu.memory_space<vmem>>, vector<1x256xf32>
    %cst_9 = arith.constant dense<0.000000e+00> : vector<2xf32>
    %26 = vector.multi_reduction <add>, %23, %cst_9 [1] : vector<2x256xf32> to vector<2xf32>
    %27 = vector.shape_cast %26 : vector<2xf32> to vector<2x1xf32>
    %cst_10 = arith.constant 2.560000e+02 : f32
    %28 = vector.broadcast %cst_10 : f32 to vector<2x1xf32>
    %29 = arith.divf %27, %28 : vector<2x1xf32>
    %30 = vector.broadcast %29 : vector<2x1xf32> to vector<2x256xf32>
    %31 = arith.subf %23, %30 : vector<2x256xf32>
    %32 = arith.mulf %31, %31 : vector<2x256xf32>
    %cst_11 = arith.constant dense<0.000000e+00> : vector<2xf32>
    %33 = vector.multi_reduction <add>, %32, %cst_11 [1] : vector<2x256xf32> to vector<2xf32>
    %34 = vector.shape_cast %33 : vector<2xf32> to vector<2x1xf32>
    %cst_12 = arith.constant 2.560000e+02 : f32
    %35 = vector.broadcast %cst_12 : f32 to vector<2x1xf32>
    %36 = arith.divf %34, %35 : vector<2x1xf32>
    %37 = vector.broadcast %29 : vector<2x1xf32> to vector<2x256xf32>
    %38 = arith.subf %23, %37 : vector<2x256xf32>
    %cst_13 = arith.constant 9.99999974E-6 : f32
    %39 = vector.broadcast %cst_13 : f32 to vector<2x1xf32>
    %40 = arith.addf %36, %39 : vector<2x1xf32>
    %41 = math.rsqrt %40 : vector<2x1xf32>
    %42 = vector.broadcast %41 : vector<2x1xf32> to vector<2x256xf32>
    %43 = arith.mulf %38, %42 : vector<2x256xf32>
    %44 = vector.broadcast %24 : vector<1x256xf32> to vector<2x256xf32>
    %45 = arith.mulf %43, %44 : vector<2x256xf32>
    %46 = vector.broadcast %25 : vector<1x256xf32> to vector<2x256xf32>
    %47 = arith.addf %45, %46 : vector<2x256xf32>
    %cst_14 = arith.constant 5.000000e-01 : f32
    %48 = vector.broadcast %cst_14 : f32 to vector<2x256xf32>
    %49 = arith.mulf %48, %47 : vector<2x256xf32>
    %cst_15 = arith.constant 4.471500e-02 : f32
    %50 = vector.broadcast %cst_15 : f32 to vector<2x256xf32>
    %51 = arith.mulf %50, %47 : vector<2x256xf32>
    %52 = arith.mulf %51, %47 : vector<2x256xf32>
    %53 = arith.mulf %52, %47 : vector<2x256xf32>
    %54 = arith.addf %47, %53 : vector<2x256xf32>
    %cst_16 = arith.constant 0.797884583 : f32
    %55 = vector.broadcast %cst_16 : f32 to vector<2x256xf32>
    %56 = arith.mulf %55, %54 : vector<2x256xf32>
    %57 = math.tanh %56 : vector<2x256xf32>
    %cst_17 = arith.constant 1.000000e+00 : f32
    %58 = vector.broadcast %cst_17 : f32 to vector<2x256xf32>
    %59 = arith.addf %58, %57 : vector<2x256xf32>
    %60 = arith.mulf %49, %59 : vector<2x256xf32>
    %61 = arith.truncf %60 : vector<2x256xf32> to vector<2x256xbf16>
    %c0_18 = arith.constant 0 : index
    %c0_19 = arith.constant 0 : index
    %62 = vector.load %arg6[%c0_18, %c0_19] : memref<256x32xbf16, #tpu.memory_space<vmem>>, vector<256x32xbf16>
    %cst_20 = arith.constant dense<0.000000e+00> : vector<2x32xf32>
    %63 = tpu.matmul %61, %62, %cst_20 {dimension_numbers = #tpu.dot_dimension_numbers<[1], [0], [0], [1], [0, 0, 1, 1], [], []>} : vector<2x256xbf16>, vector<256x32xbf16>, vector<2x32xf32> -> vector<2x32xf32>
    %c0_21 = arith.constant 0 : index
    %c0_22 = arith.constant 0 : index
    %64 = vector.load %arg7[%c0_21, %c0_22] : memref<1x32xf32, #tpu.memory_space<vmem>>, vector<1x32xf32>
    %65 = vector.broadcast %64 : vector<1x32xf32> to vector<2x32xf32>
    %66 = arith.addf %63, %65 : vector<2x32xf32>
    %c0_23 = arith.constant 0 : index
    %c0_24 = arith.constant 0 : index
    %67 = vector.load %arg8[%c0_23, %c0_24] : memref<1x32xf32, #tpu.memory_space<vmem>>, vector<1x32xf32>
    %c0_25 = arith.constant 0 : index
    %c0_26 = arith.constant 0 : index
    %68 = vector.load %arg9[%c0_25, %c0_26] : memref<1x32xf32, #tpu.memory_space<vmem>>, vector<1x32xf32>
    %cst_27 = arith.constant dense<0.000000e+00> : vector<2xf32>
    %69 = vector.multi_reduction <add>, %66, %cst_27 [1] : vector<2x32xf32> to vector<2xf32>
    %70 = vector.shape_cast %69 : vector<2xf32> to vector<2x1xf32>
    %cst_28 = arith.constant 3.200000e+01 : f32
    %71 = vector.broadcast %cst_28 : f32 to vector<2x1xf32>
    %72 = arith.divf %70, %71 : vector<2x1xf32>
    %73 = vector.broadcast %72 : vector<2x1xf32> to vector<2x32xf32>
    %74 = arith.subf %66, %73 : vector<2x32xf32>
    %75 = arith.mulf %74, %74 : vector<2x32xf32>
    %cst_29 = arith.constant dense<0.000000e+00> : vector<2xf32>
    %76 = vector.multi_reduction <add>, %75, %cst_29 [1] : vector<2x32xf32> to vector<2xf32>
    %77 = vector.shape_cast %76 : vector<2xf32> to vector<2x1xf32>
    %cst_30 = arith.constant 3.200000e+01 : f32
    %78 = vector.broadcast %cst_30 : f32 to vector<2x1xf32>
    %79 = arith.divf %77, %78 : vector<2x1xf32>
    %80 = vector.broadcast %72 : vector<2x1xf32> to vector<2x32xf32>
    %81 = arith.subf %66, %80 : vector<2x32xf32>
    %cst_31 = arith.constant 9.99999974E-6 : f32
    %82 = vector.broadcast %cst_31 : f32 to vector<2x1xf32>
    %83 = arith.addf %79, %82 : vector<2x1xf32>
    %84 = math.rsqrt %83 : vector<2x1xf32>
    %85 = vector.broadcast %84 : vector<2x1xf32> to vector<2x32xf32>
    %86 = arith.mulf %81, %85 : vector<2x32xf32>
    %87 = vector.broadcast %67 : vector<1x32xf32> to vector<2x32xf32>
    %88 = arith.mulf %86, %87 : vector<2x32xf32>
    %89 = vector.broadcast %68 : vector<1x32xf32> to vector<2x32xf32>
    %90 = arith.addf %88, %89 : vector<2x32xf32>
    %cst_32 = arith.constant 5.000000e-01 : f32
    %91 = vector.broadcast %cst_32 : f32 to vector<2x32xf32>
    %92 = arith.mulf %91, %90 : vector<2x32xf32>
    %cst_33 = arith.constant 4.471500e-02 : f32
    %93 = vector.broadcast %cst_33 : f32 to vector<2x32xf32>
    %94 = arith.mulf %93, %90 : vector<2x32xf32>
    %95 = arith.mulf %94, %90 : vector<2x32xf32>
    %96 = arith.mulf %95, %90 : vector<2x32xf32>
    %97 = arith.addf %90, %96 : vector<2x32xf32>
    %cst_34 = arith.constant 0.797884583 : f32
    %98 = vector.broadcast %cst_34 : f32 to vector<2x32xf32>
    %99 = arith.mulf %98, %97 : vector<2x32xf32>
    %100 = math.tanh %99 : vector<2x32xf32>
    %cst_35 = arith.constant 1.000000e+00 : f32
    %101 = vector.broadcast %cst_35 : f32 to vector<2x32xf32>
    %102 = arith.addf %101, %100 : vector<2x32xf32>
    %103 = arith.mulf %92, %102 : vector<2x32xf32>
    %c0_36 = arith.constant 0 : index
    %c0_37 = arith.constant 0 : index
    %104 = vector.load %arg0[%c0_36, %c0_37] : memref<2x32xf32, #tpu.memory_space<vmem>>, vector<2x32xf32>
    %105 = arith.addf %104, %103 : vector<2x32xf32>
    %106 = arith.truncf %105 : vector<2x32xf32> to vector<2x32xbf16>
    %c0_38 = arith.constant 0 : index
    %c0_39 = arith.constant 0 : index
    %107 = vector.load %arg10[%c0_38, %c0_39] : memref<32x32xbf16, #tpu.memory_space<vmem>>, vector<32x32xbf16>
    %cst_40 = arith.constant dense<0.000000e+00> : vector<2x32xf32>
    %108 = tpu.matmul %106, %107, %cst_40 {dimension_numbers = #tpu.dot_dimension_numbers<[1], [0], [0], [1], [0, 0, 1, 1], [], []>} : vector<2x32xbf16>, vector<32x32xbf16>, vector<2x32xf32> -> vector<2x32xf32>
    %c0_41 = arith.constant 0 : index
    %c0_42 = arith.constant 0 : index
    %109 = vector.load %arg11[%c0_41, %c0_42] : memref<1x32xf32, #tpu.memory_space<vmem>>, vector<1x32xf32>
    %110 = vector.broadcast %109 : vector<1x32xf32> to vector<2x32xf32>
    %111 = arith.addf %108, %110 : vector<2x32xf32>
    %c0_43 = arith.constant 0 : index
    %c0_44 = arith.constant 0 : index
    %112 = vector.load %arg12[%c0_43, %c0_44] : memref<1x32xf32, #tpu.memory_space<vmem>>, vector<1x32xf32>
    %c0_45 = arith.constant 0 : index
    %c0_46 = arith.constant 0 : index
    %113 = vector.load %arg13[%c0_45, %c0_46] : memref<1x32xf32, #tpu.memory_space<vmem>>, vector<1x32xf32>
    %cst_47 = arith.constant dense<0.000000e+00> : vector<2xf32>
    %114 = vector.multi_reduction <add>, %111, %cst_47 [1] : vector<2x32xf32> to vector<2xf32>
    %115 = vector.shape_cast %114 : vector<2xf32> to vector<2x1xf32>
    %cst_48 = arith.constant 3.200000e+01 : f32
    %116 = vector.broadcast %cst_48 : f32 to vector<2x1xf32>
    %117 = arith.divf %115, %116 : vector<2x1xf32>
    %118 = vector.broadcast %117 : vector<2x1xf32> to vector<2x32xf32>
    %119 = arith.subf %111, %118 : vector<2x32xf32>
    %120 = arith.mulf %119, %119 : vector<2x32xf32>
    %cst_49 = arith.constant dense<0.000000e+00> : vector<2xf32>
    %121 = vector.multi_reduction <add>, %120, %cst_49 [1] : vector<2x32xf32> to vector<2xf32>
    %122 = vector.shape_cast %121 : vector<2xf32> to vector<2x1xf32>
    %cst_50 = arith.constant 3.200000e+01 : f32
    %123 = vector.broadcast %cst_50 : f32 to vector<2x1xf32>
    %124 = arith.divf %122, %123 : vector<2x1xf32>
    %125 = vector.broadcast %117 : vector<2x1xf32> to vector<2x32xf32>
    %126 = arith.subf %111, %125 : vector<2x32xf32>
    %cst_51 = arith.constant 9.99999974E-6 : f32
    %127 = vector.broadcast %cst_51 : f32 to vector<2x1xf32>
    %128 = arith.addf %124, %127 : vector<2x1xf32>
    %129 = math.rsqrt %128 : vector<2x1xf32>
    %130 = vector.broadcast %129 : vector<2x1xf32> to vector<2x32xf32>
    %131 = arith.mulf %126, %130 : vector<2x32xf32>
    %132 = vector.broadcast %112 : vector<1x32xf32> to vector<2x32xf32>
    %133 = arith.mulf %131, %132 : vector<2x32xf32>
    %134 = vector.broadcast %113 : vector<1x32xf32> to vector<2x32xf32>
    %135 = arith.addf %133, %134 : vector<2x32xf32>
    %cst_52 = arith.constant 5.000000e-01 : f32
    %136 = vector.broadcast %cst_52 : f32 to vector<2x32xf32>
    %137 = arith.mulf %136, %135 : vector<2x32xf32>
    %cst_53 = arith.constant 4.471500e-02 : f32
    %138 = vector.broadcast %cst_53 : f32 to vector<2x32xf32>
    %139 = arith.mulf %138, %135 : vector<2x32xf32>
    %140 = arith.mulf %139, %135 : vector<2x32xf32>
    %141 = arith.mulf %140, %135 : vector<2x32xf32>
    %142 = arith.addf %135, %141 : vector<2x32xf32>
    %cst_54 = arith.constant 0.797884583 : f32
    %143 = vector.broadcast %cst_54 : f32 to vector<2x32xf32>
    %144 = arith.mulf %143, %142 : vector<2x32xf32>
    %145 = math.tanh %144 : vector<2x32xf32>
    %cst_55 = arith.constant 1.000000e+00 : f32
    %146 = vector.broadcast %cst_55 : f32 to vector<2x32xf32>
    %147 = arith.addf %146, %145 : vector<2x32xf32>
    %148 = arith.mulf %137, %147 : vector<2x32xf32>
    %c0_56 = arith.constant 0 : index
    %c0_57 = arith.constant 0 : index
    %149 = vector.load %arg14[%c0_56, %c0_57] : memref<1x32xf32, #tpu.memory_space<vmem>>, vector<1x32xf32>
    %150 = vector.broadcast %149 : vector<1x32xf32> to vector<2x32xf32>
    %151 = arith.mulf %148, %150 : vector<2x32xf32>
    %cst_58 = arith.constant dense<0.000000e+00> : vector<2xf32>
    %152 = vector.multi_reduction <add>, %151, %cst_58 [1] : vector<2x32xf32> to vector<2xf32>
    %153 = vector.shape_cast %152 : vector<2xf32> to vector<2x1xf32>
    %c0_59 = arith.constant 0 : index
    %c0_60 = arith.constant 0 : index
    %154 = vector.load %arg15[%c0_59, %c0_60] : memref<1x1xf32, #tpu.memory_space<vmem>>, vector<1x1xf32>
    %155 = vector.broadcast %154 : vector<1x1xf32> to vector<2x1xf32>
    %156 = arith.addf %153, %155 : vector<2x1xf32>
    %c0_61 = arith.constant 0 : index
    %c0_62 = arith.constant 0 : index
    %157 = vector.load %arg16[%c0_61, %c0_62] : memref<2x1xf32, #tpu.memory_space<vmem>>, vector<2x1xf32>
    tpu.vector_store %arg16[%c0_61, %c0_62], %156 {strides = array<i32>} : memref<2x1xf32, #tpu.memory_space<vmem>>, vector<2x1xf32>,
    return
  }
}

module attributes {stable_mosaic.version = 11 : i64} {
  func.func @encoder_kernel(%arg0: i32, %arg1: i32, %arg2: memref<16x32xbf16, #tpu.memory_space<vmem>>, %arg3: memref<2x1x8xf32, #tpu.memory_space<vmem>>, %arg4: memref<1x32xf32, #tpu.memory_space<vmem>>, %arg5: memref<1x32xf32, #tpu.memory_space<vmem>>, %arg6: memref<1x32x32xbf16, #tpu.memory_space<vmem>>, %arg7: memref<1x1x32xf32, #tpu.memory_space<vmem>>, %arg8: memref<1x32x32xbf16, #tpu.memory_space<vmem>>, %arg9: memref<1x1x32xf32, #tpu.memory_space<vmem>>, %arg10: memref<1x32x32xbf16, #tpu.memory_space<vmem>>, %arg11: memref<1x1x32xf32, #tpu.memory_space<vmem>>, %arg12: memref<1x32x32xbf16, #tpu.memory_space<vmem>>, %arg13: memref<1x1x32xf32, #tpu.memory_space<vmem>>, %arg14: memref<1x1x32xf32, #tpu.memory_space<vmem>>, %arg15: memref<1x1x32xf32, #tpu.memory_space<vmem>>, %arg16: memref<1x32x64xbf16, #tpu.memory_space<vmem>>, %arg17: memref<1x1x64xf32, #tpu.memory_space<vmem>>, %arg18: memref<1x64x32xbf16, #tpu.memory_space<vmem>>, %arg19: memref<1x1x32xf32, #tpu.memory_space<vmem>>, %arg20: memref<1x1x32xf32, #tpu.memory_space<vmem>>, %arg21: memref<1x1x32xf32, #tpu.memory_space<vmem>>, %arg22: memref<2x32xf32, #tpu.memory_space<vmem>>, %arg23: memref<16x32xf32, #tpu.memory_space<vmem>>, %arg24: memref<16x32xbf16, #tpu.memory_space<vmem>>) attributes {dimension_semantics = [#tpu.dimension_semantics<parallel>, #tpu.dimension_semantics<arbitrary>], iteration_bounds = array<i64: 1, 2>, scalar_prefetch = 0 : i64, scratch_operands = 2 : i64, tpu.core_type = #tpu.core_type<tc>, window_params = [{transform_indices = @transform_0, window_bounds = array<i64: 16, 32>}, {transform_indices = @transform_1, window_bounds = array<i64: 2, 1, 8>}, {pipeline_mode = #tpu.pipeline_mode<synchronous>, transform_indices = @transform_2, window_bounds = array<i64: 1, 32>}, {pipeline_mode = #tpu.pipeline_mode<synchronous>, transform_indices = @transform_3, window_bounds = array<i64: 1, 32>}, {transform_indices = @transform_4, window_bounds = array<i64: 1, 32, 32>}, {transform_indices = @transform_5, window_bounds = array<i64: 1, 1, 32>}, {transform_indices = @transform_6, window_bounds = array<i64: 1, 32, 32>}, {transform_indices = @transform_7, window_bounds = array<i64: 1, 1, 32>}, {transform_indices = @transform_8, window_bounds = array<i64: 1, 32, 32>}, {transform_indices = @transform_9, window_bounds = array<i64: 1, 1, 32>}, {transform_indices = @transform_10, window_bounds = array<i64: 1, 32, 32>}, {transform_indices = @transform_11, window_bounds = array<i64: 1, 1, 32>}, {transform_indices = @transform_12, window_bounds = array<i64: 1, 1, 32>}, {transform_indices = @transform_13, window_bounds = array<i64: 1, 1, 32>}, {transform_indices = @transform_14, window_bounds = array<i64: 1, 32, 64>}, {transform_indices = @transform_15, window_bounds = array<i64: 1, 1, 64>}, {transform_indices = @transform_16, window_bounds = array<i64: 1, 64, 32>}, {transform_indices = @transform_17, window_bounds = array<i64: 1, 1, 32>}, {transform_indices = @transform_18, window_bounds = array<i64: 1, 1, 32>}, {transform_indices = @transform_19, window_bounds = array<i64: 1, 1, 32>}, {transform_indices = @transform_20, window_bounds = array<i64: 2, 32>}]} {
    %c0_i32 = arith.constant 0 : i32
    %0 = arith.cmpi eq, %arg1, %c0_i32 : i32
    %1 = arith.extui %0 : i1 to i32
    %c0_i32_0 = arith.constant 0 : i32
    %2 = arith.cmpi ne, %1, %c0_i32_0 : i32
    scf.if %2 {
      %c0_115 = arith.constant 0 : index
      %c0_116 = arith.constant 0 : index
      %284 = vector.load %arg2[%c0_115, %c0_116] : memref<16x32xbf16, #tpu.memory_space<vmem>>, vector<16x32xbf16>
      %285 = arith.extf %284 : vector<16x32xbf16> to vector<16x32xf32>
      %c0_117 = arith.constant 0 : index
      %c0_118 = arith.constant 0 : index
      %286 = vector.load %arg4[%c0_117, %c0_118] : memref<1x32xf32, #tpu.memory_space<vmem>>, vector<1x32xf32>
      %c0_119 = arith.constant 0 : index
      %c0_120 = arith.constant 0 : index
      %287 = vector.load %arg5[%c0_119, %c0_120] : memref<1x32xf32, #tpu.memory_space<vmem>>, vector<1x32xf32>
      %cst_121 = arith.constant dense<0.000000e+00> : vector<16xf32>
      %288 = vector.multi_reduction <add>, %285, %cst_121 [1] : vector<16x32xf32> to vector<16xf32>
      %289 = vector.shape_cast %288 : vector<16xf32> to vector<16x1xf32>
      %cst_122 = arith.constant 3.200000e+01 : f32
      %290 = vector.broadcast %cst_122 : f32 to vector<16x1xf32>
      %291 = arith.divf %289, %290 : vector<16x1xf32>
      %292 = vector.broadcast %291 : vector<16x1xf32> to vector<16x32xf32>
      %293 = arith.subf %285, %292 : vector<16x32xf32>
      %294 = arith.mulf %293, %293 : vector<16x32xf32>
      %cst_123 = arith.constant dense<0.000000e+00> : vector<16xf32>
      %295 = vector.multi_reduction <add>, %294, %cst_123 [1] : vector<16x32xf32> to vector<16xf32>
      %296 = vector.shape_cast %295 : vector<16xf32> to vector<16x1xf32>
      %cst_124 = arith.constant 3.200000e+01 : f32
      %297 = vector.broadcast %cst_124 : f32 to vector<16x1xf32>
      %298 = arith.divf %296, %297 : vector<16x1xf32>
      %299 = vector.broadcast %291 : vector<16x1xf32> to vector<16x32xf32>
      %300 = arith.subf %285, %299 : vector<16x32xf32>
      %cst_125 = arith.constant 9.99999974E-6 : f32
      %301 = vector.broadcast %cst_125 : f32 to vector<16x1xf32>
      %302 = arith.addf %298, %301 : vector<16x1xf32>
      %303 = math.rsqrt %302 : vector<16x1xf32>
      %304 = vector.broadcast %303 : vector<16x1xf32> to vector<16x32xf32>
      %305 = arith.mulf %300, %304 : vector<16x32xf32>
      %306 = vector.broadcast %286 : vector<1x32xf32> to vector<16x32xf32>
      %307 = arith.mulf %305, %306 : vector<16x32xf32>
      %308 = vector.broadcast %287 : vector<1x32xf32> to vector<16x32xf32>
      %309 = arith.addf %307, %308 : vector<16x32xf32>
      %c0_126 = arith.constant 0 : index
      %c0_127 = arith.constant 0 : index
      %310 = vector.load %arg23[%c0_126, %c0_127] : memref<16x32xf32, #tpu.memory_space<vmem>>, vector<16x32xf32>
      tpu.vector_store %arg23[%c0_126, %c0_127], %309 {strides = array<i32>} : memref<16x32xf32, #tpu.memory_space<vmem>>, vector<16x32xf32>,
    } else {
    }
    %c0 = arith.constant 0 : index
    %c0_1 = arith.constant 0 : index
    %3 = vector.load %arg23[%c0, %c0_1] : memref<16x32xf32, #tpu.memory_space<vmem>>, vector<16x32xf32>
    %4 = arith.truncf %3 : vector<16x32xf32> to vector<16x32xbf16>
    %c0_2 = arith.constant 0 : index
    %c0_3 = arith.constant 0 : index
    %c0_4 = arith.constant 0 : index
    %5 = vector.load %arg6[%c0_2, %c0_3, %c0_4] : memref<1x32x32xbf16, #tpu.memory_space<vmem>>, vector<1x32x32xbf16>
    %6 = vector.shape_cast %5 : vector<1x32x32xbf16> to vector<32x32xbf16>
    %cst = arith.constant dense<0.000000e+00> : vector<16x32xf32>
    %7 = tpu.matmul %4, %6, %cst {dimension_numbers = #tpu.dot_dimension_numbers<[1], [0], [0], [1], [0, 0, 1, 1], [], []>} : vector<16x32xbf16>, vector<32x32xbf16>, vector<16x32xf32> -> vector<16x32xf32>
    %c0_5 = arith.constant 0 : index
    %c0_6 = arith.constant 0 : index
    %c0_7 = arith.constant 0 : index
    %8 = vector.load %arg7[%c0_5, %c0_6, %c0_7] : memref<1x1x32xf32, #tpu.memory_space<vmem>>, vector<1x1x32xf32>
    %9 = vector.shape_cast %8 : vector<1x1x32xf32> to vector<1x32xf32>
    %10 = vector.broadcast %9 : vector<1x32xf32> to vector<16x32xf32>
    %11 = arith.addf %7, %10 : vector<16x32xf32>
    %c0_8 = arith.constant 0 : index
    %c0_9 = arith.constant 0 : index
    %c0_10 = arith.constant 0 : index
    %12 = vector.load %arg8[%c0_8, %c0_9, %c0_10] : memref<1x32x32xbf16, #tpu.memory_space<vmem>>, vector<1x32x32xbf16>
    %13 = vector.shape_cast %12 : vector<1x32x32xbf16> to vector<32x32xbf16>
    %cst_11 = arith.constant dense<0.000000e+00> : vector<16x32xf32>
    %14 = tpu.matmul %4, %13, %cst_11 {dimension_numbers = #tpu.dot_dimension_numbers<[1], [0], [0], [1], [0, 0, 1, 1], [], []>} : vector<16x32xbf16>, vector<32x32xbf16>, vector<16x32xf32> -> vector<16x32xf32>
    %c0_12 = arith.constant 0 : index
    %c0_13 = arith.constant 0 : index
    %c0_14 = arith.constant 0 : index
    %15 = vector.load %arg9[%c0_12, %c0_13, %c0_14] : memref<1x1x32xf32, #tpu.memory_space<vmem>>, vector<1x1x32xf32>
    %16 = vector.shape_cast %15 : vector<1x1x32xf32> to vector<1x32xf32>
    %17 = vector.broadcast %16 : vector<1x32xf32> to vector<16x32xf32>
    %18 = arith.addf %14, %17 : vector<16x32xf32>
    %c0_15 = arith.constant 0 : index
    %c0_16 = arith.constant 0 : index
    %c0_17 = arith.constant 0 : index
    %19 = vector.load %arg10[%c0_15, %c0_16, %c0_17] : memref<1x32x32xbf16, #tpu.memory_space<vmem>>, vector<1x32x32xbf16>
    %20 = vector.shape_cast %19 : vector<1x32x32xbf16> to vector<32x32xbf16>
    %cst_18 = arith.constant dense<0.000000e+00> : vector<16x32xf32>
    %21 = tpu.matmul %4, %20, %cst_18 {dimension_numbers = #tpu.dot_dimension_numbers<[1], [0], [0], [1], [0, 0, 1, 1], [], []>} : vector<16x32xbf16>, vector<32x32xbf16>, vector<16x32xf32> -> vector<16x32xf32>
    %c0_19 = arith.constant 0 : index
    %c0_20 = arith.constant 0 : index
    %c0_21 = arith.constant 0 : index
    %22 = vector.load %arg11[%c0_19, %c0_20, %c0_21] : memref<1x1x32xf32, #tpu.memory_space<vmem>>, vector<1x1x32xf32>
    %23 = vector.shape_cast %22 : vector<1x1x32xf32> to vector<1x32xf32>
    %24 = vector.broadcast %23 : vector<1x32xf32> to vector<16x32xf32>
    %25 = arith.addf %21, %24 : vector<16x32xf32>
    %cst_22 = arith.constant 0.353553385 : f32
    %26 = vector.broadcast %cst_22 : f32 to vector<16x32xf32>
    %27 = arith.mulf %11, %26 : vector<16x32xf32>
    %28 = arith.truncf %25 : vector<16x32xf32> to vector<16x32xbf16>
    %29 = vector.extract_strided_slice %27 {offsets = [0, 0], sizes = [8, 32], strides = [1, 1]} : vector<16x32xf32> to vector<8x32xf32>
    %30 = vector.extract_strided_slice %18 {offsets = [0, 0], sizes = [8, 32], strides = [1, 1]} : vector<16x32xf32> to vector<8x32xf32>
    %31 = vector.extract_strided_slice %28 {offsets = [0, 0], sizes = [8, 32], strides = [1, 1]} : vector<16x32xbf16> to vector<8x32xbf16>
    %c0_23 = arith.constant 0 : index
    %c0_24 = arith.constant 0 : index
    %c0_25 = arith.constant 0 : index
    %32 = vector.load %arg3[%c0_23, %c0_24, %c0_25] : memref<2x1x8xf32, #tpu.memory_space<vmem>>, vector<1x1x8xf32>
    %33 = vector.shape_cast %32 : vector<1x1x8xf32> to vector<1x8xf32>
    %34 = vector.extract_strided_slice %29 {offsets = [0, 0], sizes = [8, 8], strides = [1, 1]} : vector<8x32xf32> to vector<8x8xf32>
    %35 = vector.extract_strided_slice %30 {offsets = [0, 0], sizes = [8, 8], strides = [1, 1]} : vector<8x32xf32> to vector<8x8xf32>
    %cst_26 = arith.constant dense<0.000000e+00> : vector<8x8xf32>
    %36 = tpu.matmul %34, %35, %cst_26 {dimension_numbers = #tpu.dot_dimension_numbers<[1], [1], [0], [0], [0, 0, 1, 0], [], []>} : vector<8x8xf32>, vector<8x8xf32>, vector<8x8xf32> -> vector<8x8xf32>
    %37 = vector.broadcast %33 : vector<1x8xf32> to vector<8x8xf32>
    %38 = arith.addf %36, %37 : vector<8x8xf32>
    %cst_27 = arith.constant dense<0xFF800000> : vector<8xf32>
    %39 = vector.multi_reduction <maximumf>, %38, %cst_27 [1] : vector<8x8xf32> to vector<8xf32>
    %40 = vector.shape_cast %39 : vector<8xf32> to vector<8x1xf32>
    %41 = vector.broadcast %40 : vector<8x1xf32> to vector<8x8xf32>
    %42 = arith.subf %38, %41 : vector<8x8xf32>
    %43 = math.exp %42 : vector<8x8xf32>
    %cst_28 = arith.constant dense<0.000000e+00> : vector<8xf32>
    %44 = vector.multi_reduction <add>, %43, %cst_28 [1] : vector<8x8xf32> to vector<8xf32>
    %45 = vector.shape_cast %44 : vector<8xf32> to vector<8x1xf32>
    %46 = tpu.reciprocal %45 {approx = true} : vector<8x1xf32> -> vector<8x1xf32>
    %47 = vector.broadcast %46 : vector<8x1xf32> to vector<8x8xf32>
    %48 = arith.mulf %43, %47 : vector<8x8xf32>
    %49 = arith.truncf %48 : vector<8x8xf32> to vector<8x8xbf16>
    %50 = vector.extract_strided_slice %31 {offsets = [0, 0], sizes = [8, 8], strides = [1, 1]} : vector<8x32xbf16> to vector<8x8xbf16>
    %cst_29 = arith.constant dense<0.000000e+00> : vector<8x8xf32>
    %51 = tpu.matmul %49, %50, %cst_29 {dimension_numbers = #tpu.dot_dimension_numbers<[1], [0], [0], [1], [0, 0, 1, 1], [], []>} : vector<8x8xbf16>, vector<8x8xbf16>, vector<8x8xf32> -> vector<8x8xf32>
    %52 = vector.extract_strided_slice %29 {offsets = [0, 8], sizes = [8, 8], strides = [1, 1]} : vector<8x32xf32> to vector<8x8xf32>
    %53 = vector.extract_strided_slice %30 {offsets = [0, 8], sizes = [8, 8], strides = [1, 1]} : vector<8x32xf32> to vector<8x8xf32>
    %cst_30 = arith.constant dense<0.000000e+00> : vector<8x8xf32>
    %54 = tpu.matmul %52, %53, %cst_30 {dimension_numbers = #tpu.dot_dimension_numbers<[1], [1], [0], [0], [0, 0, 1, 0], [], []>} : vector<8x8xf32>, vector<8x8xf32>, vector<8x8xf32> -> vector<8x8xf32>
    %55 = vector.broadcast %33 : vector<1x8xf32> to vector<8x8xf32>
    %56 = arith.addf %54, %55 : vector<8x8xf32>
    %cst_31 = arith.constant dense<0xFF800000> : vector<8xf32>
    %57 = vector.multi_reduction <maximumf>, %56, %cst_31 [1] : vector<8x8xf32> to vector<8xf32>
    %58 = vector.shape_cast %57 : vector<8xf32> to vector<8x1xf32>
    %59 = vector.broadcast %58 : vector<8x1xf32> to vector<8x8xf32>
    %60 = arith.subf %56, %59 : vector<8x8xf32>
    %61 = math.exp %60 : vector<8x8xf32>
    %cst_32 = arith.constant dense<0.000000e+00> : vector<8xf32>
    %62 = vector.multi_reduction <add>, %61, %cst_32 [1] : vector<8x8xf32> to vector<8xf32>
    %63 = vector.shape_cast %62 : vector<8xf32> to vector<8x1xf32>
    %64 = tpu.reciprocal %63 {approx = true} : vector<8x1xf32> -> vector<8x1xf32>
    %65 = vector.broadcast %64 : vector<8x1xf32> to vector<8x8xf32>
    %66 = arith.mulf %61, %65 : vector<8x8xf32>
    %67 = arith.truncf %66 : vector<8x8xf32> to vector<8x8xbf16>
    %68 = vector.extract_strided_slice %31 {offsets = [0, 8], sizes = [8, 8], strides = [1, 1]} : vector<8x32xbf16> to vector<8x8xbf16>
    %cst_33 = arith.constant dense<0.000000e+00> : vector<8x8xf32>
    %69 = tpu.matmul %67, %68, %cst_33 {dimension_numbers = #tpu.dot_dimension_numbers<[1], [0], [0], [1], [0, 0, 1, 1], [], []>} : vector<8x8xbf16>, vector<8x8xbf16>, vector<8x8xf32> -> vector<8x8xf32>
    %70 = vector.extract_strided_slice %29 {offsets = [0, 16], sizes = [8, 8], strides = [1, 1]} : vector<8x32xf32> to vector<8x8xf32>
    %71 = vector.extract_strided_slice %30 {offsets = [0, 16], sizes = [8, 8], strides = [1, 1]} : vector<8x32xf32> to vector<8x8xf32>
    %cst_34 = arith.constant dense<0.000000e+00> : vector<8x8xf32>
    %72 = tpu.matmul %70, %71, %cst_34 {dimension_numbers = #tpu.dot_dimension_numbers<[1], [1], [0], [0], [0, 0, 1, 0], [], []>} : vector<8x8xf32>, vector<8x8xf32>, vector<8x8xf32> -> vector<8x8xf32>
    %73 = vector.broadcast %33 : vector<1x8xf32> to vector<8x8xf32>
    %74 = arith.addf %72, %73 : vector<8x8xf32>
    %cst_35 = arith.constant dense<0xFF800000> : vector<8xf32>
    %75 = vector.multi_reduction <maximumf>, %74, %cst_35 [1] : vector<8x8xf32> to vector<8xf32>
    %76 = vector.shape_cast %75 : vector<8xf32> to vector<8x1xf32>
    %77 = vector.broadcast %76 : vector<8x1xf32> to vector<8x8xf32>
    %78 = arith.subf %74, %77 : vector<8x8xf32>
    %79 = math.exp %78 : vector<8x8xf32>
    %cst_36 = arith.constant dense<0.000000e+00> : vector<8xf32>
    %80 = vector.multi_reduction <add>, %79, %cst_36 [1] : vector<8x8xf32> to vector<8xf32>
    %81 = vector.shape_cast %80 : vector<8xf32> to vector<8x1xf32>
    %82 = tpu.reciprocal %81 {approx = true} : vector<8x1xf32> -> vector<8x1xf32>
    %83 = vector.broadcast %82 : vector<8x1xf32> to vector<8x8xf32>
    %84 = arith.mulf %79, %83 : vector<8x8xf32>
    %85 = arith.truncf %84 : vector<8x8xf32> to vector<8x8xbf16>
    %86 = vector.extract_strided_slice %31 {offsets = [0, 16], sizes = [8, 8], strides = [1, 1]} : vector<8x32xbf16> to vector<8x8xbf16>
    %cst_37 = arith.constant dense<0.000000e+00> : vector<8x8xf32>
    %87 = tpu.matmul %85, %86, %cst_37 {dimension_numbers = #tpu.dot_dimension_numbers<[1], [0], [0], [1], [0, 0, 1, 1], [], []>} : vector<8x8xbf16>, vector<8x8xbf16>, vector<8x8xf32> -> vector<8x8xf32>
    %88 = vector.extract_strided_slice %29 {offsets = [0, 24], sizes = [8, 8], strides = [1, 1]} : vector<8x32xf32> to vector<8x8xf32>
    %89 = vector.extract_strided_slice %30 {offsets = [0, 24], sizes = [8, 8], strides = [1, 1]} : vector<8x32xf32> to vector<8x8xf32>
    %cst_38 = arith.constant dense<0.000000e+00> : vector<8x8xf32>
    %90 = tpu.matmul %88, %89, %cst_38 {dimension_numbers = #tpu.dot_dimension_numbers<[1], [1], [0], [0], [0, 0, 1, 0], [], []>} : vector<8x8xf32>, vector<8x8xf32>, vector<8x8xf32> -> vector<8x8xf32>
    %91 = vector.broadcast %33 : vector<1x8xf32> to vector<8x8xf32>
    %92 = arith.addf %90, %91 : vector<8x8xf32>
    %cst_39 = arith.constant dense<0xFF800000> : vector<8xf32>
    %93 = vector.multi_reduction <maximumf>, %92, %cst_39 [1] : vector<8x8xf32> to vector<8xf32>
    %94 = vector.shape_cast %93 : vector<8xf32> to vector<8x1xf32>
    %95 = vector.broadcast %94 : vector<8x1xf32> to vector<8x8xf32>
    %96 = arith.subf %92, %95 : vector<8x8xf32>
    %97 = math.exp %96 : vector<8x8xf32>
    %cst_40 = arith.constant dense<0.000000e+00> : vector<8xf32>
    %98 = vector.multi_reduction <add>, %97, %cst_40 [1] : vector<8x8xf32> to vector<8xf32>
    %99 = vector.shape_cast %98 : vector<8xf32> to vector<8x1xf32>
    %100 = tpu.reciprocal %99 {approx = true} : vector<8x1xf32> -> vector<8x1xf32>
    %101 = vector.broadcast %100 : vector<8x1xf32> to vector<8x8xf32>
    %102 = arith.mulf %97, %101 : vector<8x8xf32>
    %103 = arith.truncf %102 : vector<8x8xf32> to vector<8x8xbf16>
    %104 = vector.extract_strided_slice %31 {offsets = [0, 24], sizes = [8, 8], strides = [1, 1]} : vector<8x32xbf16> to vector<8x8xbf16>
    %cst_41 = arith.constant dense<0.000000e+00> : vector<8x8xf32>
    %105 = tpu.matmul %103, %104, %cst_41 {dimension_numbers = #tpu.dot_dimension_numbers<[1], [0], [0], [1], [0, 0, 1, 1], [], []>} : vector<8x8xbf16>, vector<8x8xbf16>, vector<8x8xf32> -> vector<8x8xf32>
    %106 = tpu.concatenate %51, %69, %87, %105 in 1 : vector<8x8xf32>, vector<8x8xf32>, vector<8x8xf32>, vector<8x8xf32> -> vector<8x32xf32>
    %107 = arith.truncf %106 : vector<8x32xf32> to vector<8x32xbf16>
    %c0_42 = arith.constant 0 : index
    %c0_43 = arith.constant 0 : index
    %108 = vector.load %arg24[%c0_42, %c0_43] : memref<16x32xbf16, #tpu.memory_space<vmem>>, vector<8x32xbf16>
    tpu.vector_store %arg24[%c0_42, %c0_43], %107 {strides = array<i32>} : memref<16x32xbf16, #tpu.memory_space<vmem>>, vector<8x32xbf16>,
    %109 = vector.extract_strided_slice %27 {offsets = [8, 0], sizes = [8, 32], strides = [1, 1]} : vector<16x32xf32> to vector<8x32xf32>
    %110 = vector.extract_strided_slice %18 {offsets = [8, 0], sizes = [8, 32], strides = [1, 1]} : vector<16x32xf32> to vector<8x32xf32>
    %111 = vector.extract_strided_slice %28 {offsets = [8, 0], sizes = [8, 32], strides = [1, 1]} : vector<16x32xbf16> to vector<8x32xbf16>
    %c1 = arith.constant 1 : index
    %c0_44 = arith.constant 0 : index
    %c0_45 = arith.constant 0 : index
    %112 = vector.load %arg3[%c1, %c0_44, %c0_45] : memref<2x1x8xf32, #tpu.memory_space<vmem>>, vector<1x1x8xf32>
    %113 = vector.shape_cast %112 : vector<1x1x8xf32> to vector<1x8xf32>
    %114 = vector.extract_strided_slice %109 {offsets = [0, 0], sizes = [8, 8], strides = [1, 1]} : vector<8x32xf32> to vector<8x8xf32>
    %115 = vector.extract_strided_slice %110 {offsets = [0, 0], sizes = [8, 8], strides = [1, 1]} : vector<8x32xf32> to vector<8x8xf32>
    %cst_46 = arith.constant dense<0.000000e+00> : vector<8x8xf32>
    %116 = tpu.matmul %114, %115, %cst_46 {dimension_numbers = #tpu.dot_dimension_numbers<[1], [1], [0], [0], [0, 0, 1, 0], [], []>} : vector<8x8xf32>, vector<8x8xf32>, vector<8x8xf32> -> vector<8x8xf32>
    %117 = vector.broadcast %113 : vector<1x8xf32> to vector<8x8xf32>
    %118 = arith.addf %116, %117 : vector<8x8xf32>
    %cst_47 = arith.constant dense<0xFF800000> : vector<8xf32>
    %119 = vector.multi_reduction <maximumf>, %118, %cst_47 [1] : vector<8x8xf32> to vector<8xf32>
    %120 = vector.shape_cast %119 : vector<8xf32> to vector<8x1xf32>
    %121 = vector.broadcast %120 : vector<8x1xf32> to vector<8x8xf32>
    %122 = arith.subf %118, %121 : vector<8x8xf32>
    %123 = math.exp %122 : vector<8x8xf32>
    %cst_48 = arith.constant dense<0.000000e+00> : vector<8xf32>
    %124 = vector.multi_reduction <add>, %123, %cst_48 [1] : vector<8x8xf32> to vector<8xf32>
    %125 = vector.shape_cast %124 : vector<8xf32> to vector<8x1xf32>
    %126 = tpu.reciprocal %125 {approx = true} : vector<8x1xf32> -> vector<8x1xf32>
    %127 = vector.broadcast %126 : vector<8x1xf32> to vector<8x8xf32>
    %128 = arith.mulf %123, %127 : vector<8x8xf32>
    %129 = arith.truncf %128 : vector<8x8xf32> to vector<8x8xbf16>
    %130 = vector.extract_strided_slice %111 {offsets = [0, 0], sizes = [8, 8], strides = [1, 1]} : vector<8x32xbf16> to vector<8x8xbf16>
    %cst_49 = arith.constant dense<0.000000e+00> : vector<8x8xf32>
    %131 = tpu.matmul %129, %130, %cst_49 {dimension_numbers = #tpu.dot_dimension_numbers<[1], [0], [0], [1], [0, 0, 1, 1], [], []>} : vector<8x8xbf16>, vector<8x8xbf16>, vector<8x8xf32> -> vector<8x8xf32>
    %132 = vector.extract_strided_slice %109 {offsets = [0, 8], sizes = [8, 8], strides = [1, 1]} : vector<8x32xf32> to vector<8x8xf32>
    %133 = vector.extract_strided_slice %110 {offsets = [0, 8], sizes = [8, 8], strides = [1, 1]} : vector<8x32xf32> to vector<8x8xf32>
    %cst_50 = arith.constant dense<0.000000e+00> : vector<8x8xf32>
    %134 = tpu.matmul %132, %133, %cst_50 {dimension_numbers = #tpu.dot_dimension_numbers<[1], [1], [0], [0], [0, 0, 1, 0], [], []>} : vector<8x8xf32>, vector<8x8xf32>, vector<8x8xf32> -> vector<8x8xf32>
    %135 = vector.broadcast %113 : vector<1x8xf32> to vector<8x8xf32>
    %136 = arith.addf %134, %135 : vector<8x8xf32>
    %cst_51 = arith.constant dense<0xFF800000> : vector<8xf32>
    %137 = vector.multi_reduction <maximumf>, %136, %cst_51 [1] : vector<8x8xf32> to vector<8xf32>
    %138 = vector.shape_cast %137 : vector<8xf32> to vector<8x1xf32>
    %139 = vector.broadcast %138 : vector<8x1xf32> to vector<8x8xf32>
    %140 = arith.subf %136, %139 : vector<8x8xf32>
    %141 = math.exp %140 : vector<8x8xf32>
    %cst_52 = arith.constant dense<0.000000e+00> : vector<8xf32>
    %142 = vector.multi_reduction <add>, %141, %cst_52 [1] : vector<8x8xf32> to vector<8xf32>
    %143 = vector.shape_cast %142 : vector<8xf32> to vector<8x1xf32>
    %144 = tpu.reciprocal %143 {approx = true} : vector<8x1xf32> -> vector<8x1xf32>
    %145 = vector.broadcast %144 : vector<8x1xf32> to vector<8x8xf32>
    %146 = arith.mulf %141, %145 : vector<8x8xf32>
    %147 = arith.truncf %146 : vector<8x8xf32> to vector<8x8xbf16>
    %148 = vector.extract_strided_slice %111 {offsets = [0, 8], sizes = [8, 8], strides = [1, 1]} : vector<8x32xbf16> to vector<8x8xbf16>
    %cst_53 = arith.constant dense<0.000000e+00> : vector<8x8xf32>
    %149 = tpu.matmul %147, %148, %cst_53 {dimension_numbers = #tpu.dot_dimension_numbers<[1], [0], [0], [1], [0, 0, 1, 1], [], []>} : vector<8x8xbf16>, vector<8x8xbf16>, vector<8x8xf32> -> vector<8x8xf32>
    %150 = vector.extract_strided_slice %109 {offsets = [0, 16], sizes = [8, 8], strides = [1, 1]} : vector<8x32xf32> to vector<8x8xf32>
    %151 = vector.extract_strided_slice %110 {offsets = [0, 16], sizes = [8, 8], strides = [1, 1]} : vector<8x32xf32> to vector<8x8xf32>
    %cst_54 = arith.constant dense<0.000000e+00> : vector<8x8xf32>
    %152 = tpu.matmul %150, %151, %cst_54 {dimension_numbers = #tpu.dot_dimension_numbers<[1], [1], [0], [0], [0, 0, 1, 0], [], []>} : vector<8x8xf32>, vector<8x8xf32>, vector<8x8xf32> -> vector<8x8xf32>
    %153 = vector.broadcast %113 : vector<1x8xf32> to vector<8x8xf32>
    %154 = arith.addf %152, %153 : vector<8x8xf32>
    %cst_55 = arith.constant dense<0xFF800000> : vector<8xf32>
    %155 = vector.multi_reduction <maximumf>, %154, %cst_55 [1] : vector<8x8xf32> to vector<8xf32>
    %156 = vector.shape_cast %155 : vector<8xf32> to vector<8x1xf32>
    %157 = vector.broadcast %156 : vector<8x1xf32> to vector<8x8xf32>
    %158 = arith.subf %154, %157 : vector<8x8xf32>
    %159 = math.exp %158 : vector<8x8xf32>
    %cst_56 = arith.constant dense<0.000000e+00> : vector<8xf32>
    %160 = vector.multi_reduction <add>, %159, %cst_56 [1] : vector<8x8xf32> to vector<8xf32>
    %161 = vector.shape_cast %160 : vector<8xf32> to vector<8x1xf32>
    %162 = tpu.reciprocal %161 {approx = true} : vector<8x1xf32> -> vector<8x1xf32>
    %163 = vector.broadcast %162 : vector<8x1xf32> to vector<8x8xf32>
    %164 = arith.mulf %159, %163 : vector<8x8xf32>
    %165 = arith.truncf %164 : vector<8x8xf32> to vector<8x8xbf16>
    %166 = vector.extract_strided_slice %111 {offsets = [0, 16], sizes = [8, 8], strides = [1, 1]} : vector<8x32xbf16> to vector<8x8xbf16>
    %cst_57 = arith.constant dense<0.000000e+00> : vector<8x8xf32>
    %167 = tpu.matmul %165, %166, %cst_57 {dimension_numbers = #tpu.dot_dimension_numbers<[1], [0], [0], [1], [0, 0, 1, 1], [], []>} : vector<8x8xbf16>, vector<8x8xbf16>, vector<8x8xf32> -> vector<8x8xf32>
    %168 = vector.extract_strided_slice %109 {offsets = [0, 24], sizes = [8, 8], strides = [1, 1]} : vector<8x32xf32> to vector<8x8xf32>
    %169 = vector.extract_strided_slice %110 {offsets = [0, 24], sizes = [8, 8], strides = [1, 1]} : vector<8x32xf32> to vector<8x8xf32>
    %cst_58 = arith.constant dense<0.000000e+00> : vector<8x8xf32>
    %170 = tpu.matmul %168, %169, %cst_58 {dimension_numbers = #tpu.dot_dimension_numbers<[1], [1], [0], [0], [0, 0, 1, 0], [], []>} : vector<8x8xf32>, vector<8x8xf32>, vector<8x8xf32> -> vector<8x8xf32>
    %171 = vector.broadcast %113 : vector<1x8xf32> to vector<8x8xf32>
    %172 = arith.addf %170, %171 : vector<8x8xf32>
    %cst_59 = arith.constant dense<0xFF800000> : vector<8xf32>
    %173 = vector.multi_reduction <maximumf>, %172, %cst_59 [1] : vector<8x8xf32> to vector<8xf32>
    %174 = vector.shape_cast %173 : vector<8xf32> to vector<8x1xf32>
    %175 = vector.broadcast %174 : vector<8x1xf32> to vector<8x8xf32>
    %176 = arith.subf %172, %175 : vector<8x8xf32>
    %177 = math.exp %176 : vector<8x8xf32>
    %cst_60 = arith.constant dense<0.000000e+00> : vector<8xf32>
    %178 = vector.multi_reduction <add>, %177, %cst_60 [1] : vector<8x8xf32> to vector<8xf32>
    %179 = vector.shape_cast %178 : vector<8xf32> to vector<8x1xf32>
    %180 = tpu.reciprocal %179 {approx = true} : vector<8x1xf32> -> vector<8x1xf32>
    %181 = vector.broadcast %180 : vector<8x1xf32> to vector<8x8xf32>
    %182 = arith.mulf %177, %181 : vector<8x8xf32>
    %183 = arith.truncf %182 : vector<8x8xf32> to vector<8x8xbf16>
    %184 = vector.extract_strided_slice %111 {offsets = [0, 24], sizes = [8, 8], strides = [1, 1]} : vector<8x32xbf16> to vector<8x8xbf16>
    %cst_61 = arith.constant dense<0.000000e+00> : vector<8x8xf32>
    %185 = tpu.matmul %183, %184, %cst_61 {dimension_numbers = #tpu.dot_dimension_numbers<[1], [0], [0], [1], [0, 0, 1, 1], [], []>} : vector<8x8xbf16>, vector<8x8xbf16>, vector<8x8xf32> -> vector<8x8xf32>
    %186 = tpu.concatenate %131, %149, %167, %185 in 1 : vector<8x8xf32>, vector<8x8xf32>, vector<8x8xf32>, vector<8x8xf32> -> vector<8x32xf32>
    %187 = arith.truncf %186 : vector<8x32xf32> to vector<8x32xbf16>
    %c8 = arith.constant 8 : index
    %c0_62 = arith.constant 0 : index
    %188 = vector.load %arg24[%c8, %c0_62] : memref<16x32xbf16, #tpu.memory_space<vmem>>, vector<8x32xbf16>
    tpu.vector_store %arg24[%c8, %c0_62], %187 {strides = array<i32>} : memref<16x32xbf16, #tpu.memory_space<vmem>>, vector<8x32xbf16>,
    %c0_63 = arith.constant 0 : index
    %c0_64 = arith.constant 0 : index
    %189 = vector.load %arg24[%c0_63, %c0_64] : memref<16x32xbf16, #tpu.memory_space<vmem>>, vector<16x32xbf16>
    %c0_65 = arith.constant 0 : index
    %c0_66 = arith.constant 0 : index
    %c0_67 = arith.constant 0 : index
    %190 = vector.load %arg12[%c0_65, %c0_66, %c0_67] : memref<1x32x32xbf16, #tpu.memory_space<vmem>>, vector<1x32x32xbf16>
    %191 = vector.shape_cast %190 : vector<1x32x32xbf16> to vector<32x32xbf16>
    %cst_68 = arith.constant dense<0.000000e+00> : vector<16x32xf32>
    %192 = tpu.matmul %189, %191, %cst_68 {dimension_numbers = #tpu.dot_dimension_numbers<[1], [0], [0], [1], [0, 0, 1, 1], [], []>} : vector<16x32xbf16>, vector<32x32xbf16>, vector<16x32xf32> -> vector<16x32xf32>
    %c0_69 = arith.constant 0 : index
    %c0_70 = arith.constant 0 : index
    %c0_71 = arith.constant 0 : index
    %193 = vector.load %arg13[%c0_69, %c0_70, %c0_71] : memref<1x1x32xf32, #tpu.memory_space<vmem>>, vector<1x1x32xf32>
    %194 = vector.shape_cast %193 : vector<1x1x32xf32> to vector<1x32xf32>
    %195 = vector.broadcast %194 : vector<1x32xf32> to vector<16x32xf32>
    %196 = arith.addf %192, %195 : vector<16x32xf32>
    %197 = arith.addf %3, %196 : vector<16x32xf32>
    %c0_72 = arith.constant 0 : index
    %c0_73 = arith.constant 0 : index
    %c0_74 = arith.constant 0 : index
    %198 = vector.load %arg14[%c0_72, %c0_73, %c0_74] : memref<1x1x32xf32, #tpu.memory_space<vmem>>, vector<1x1x32xf32>
    %199 = vector.shape_cast %198 : vector<1x1x32xf32> to vector<1x32xf32>
    %c0_75 = arith.constant 0 : index
    %c0_76 = arith.constant 0 : index
    %c0_77 = arith.constant 0 : index
    %200 = vector.load %arg15[%c0_75, %c0_76, %c0_77] : memref<1x1x32xf32, #tpu.memory_space<vmem>>, vector<1x1x32xf32>
    %201 = vector.shape_cast %200 : vector<1x1x32xf32> to vector<1x32xf32>
    %cst_78 = arith.constant dense<0.000000e+00> : vector<16xf32>
    %202 = vector.multi_reduction <add>, %197, %cst_78 [1] : vector<16x32xf32> to vector<16xf32>
    %203 = vector.shape_cast %202 : vector<16xf32> to vector<16x1xf32>
    %cst_79 = arith.constant 3.200000e+01 : f32
    %204 = vector.broadcast %cst_79 : f32 to vector<16x1xf32>
    %205 = arith.divf %203, %204 : vector<16x1xf32>
    %206 = vector.broadcast %205 : vector<16x1xf32> to vector<16x32xf32>
    %207 = arith.subf %197, %206 : vector<16x32xf32>
    %208 = arith.mulf %207, %207 : vector<16x32xf32>
    %cst_80 = arith.constant dense<0.000000e+00> : vector<16xf32>
    %209 = vector.multi_reduction <add>, %208, %cst_80 [1] : vector<16x32xf32> to vector<16xf32>
    %210 = vector.shape_cast %209 : vector<16xf32> to vector<16x1xf32>
    %cst_81 = arith.constant 3.200000e+01 : f32
    %211 = vector.broadcast %cst_81 : f32 to vector<16x1xf32>
    %212 = arith.divf %210, %211 : vector<16x1xf32>
    %213 = vector.broadcast %205 : vector<16x1xf32> to vector<16x32xf32>
    %214 = arith.subf %197, %213 : vector<16x32xf32>
    %cst_82 = arith.constant 9.99999974E-6 : f32
    %215 = vector.broadcast %cst_82 : f32 to vector<16x1xf32>
    %216 = arith.addf %212, %215 : vector<16x1xf32>
    %217 = math.rsqrt %216 : vector<16x1xf32>
    %218 = vector.broadcast %217 : vector<16x1xf32> to vector<16x32xf32>
    %219 = arith.mulf %214, %218 : vector<16x32xf32>
    %220 = vector.broadcast %199 : vector<1x32xf32> to vector<16x32xf32>
    %221 = arith.mulf %219, %220 : vector<16x32xf32>
    %222 = vector.broadcast %201 : vector<1x32xf32> to vector<16x32xf32>
    %223 = arith.addf %221, %222 : vector<16x32xf32>
    %224 = arith.truncf %223 : vector<16x32xf32> to vector<16x32xbf16>
    %c0_83 = arith.constant 0 : index
    %c0_84 = arith.constant 0 : index
    %c0_85 = arith.constant 0 : index
    %225 = vector.load %arg16[%c0_83, %c0_84, %c0_85] : memref<1x32x64xbf16, #tpu.memory_space<vmem>>, vector<1x32x64xbf16>
    %226 = vector.shape_cast %225 : vector<1x32x64xbf16> to vector<32x64xbf16>
    %cst_86 = arith.constant dense<0.000000e+00> : vector<16x64xf32>
    %227 = tpu.matmul %224, %226, %cst_86 {dimension_numbers = #tpu.dot_dimension_numbers<[1], [0], [0], [1], [0, 0, 1, 1], [], []>} : vector<16x32xbf16>, vector<32x64xbf16>, vector<16x64xf32> -> vector<16x64xf32>
    %c0_87 = arith.constant 0 : index
    %c0_88 = arith.constant 0 : index
    %c0_89 = arith.constant 0 : index
    %228 = vector.load %arg17[%c0_87, %c0_88, %c0_89] : memref<1x1x64xf32, #tpu.memory_space<vmem>>, vector<1x1x64xf32>
    %229 = vector.shape_cast %228 : vector<1x1x64xf32> to vector<1x64xf32>
    %230 = vector.broadcast %229 : vector<1x64xf32> to vector<16x64xf32>
    %231 = arith.addf %227, %230 : vector<16x64xf32>
    %cst_90 = arith.constant 5.000000e-01 : f32
    %232 = vector.broadcast %cst_90 : f32 to vector<16x64xf32>
    %233 = arith.mulf %232, %231 : vector<16x64xf32>
    %cst_91 = arith.constant 4.471500e-02 : f32
    %234 = vector.broadcast %cst_91 : f32 to vector<16x64xf32>
    %235 = arith.mulf %234, %231 : vector<16x64xf32>
    %236 = arith.mulf %235, %231 : vector<16x64xf32>
    %237 = arith.mulf %236, %231 : vector<16x64xf32>
    %238 = arith.addf %231, %237 : vector<16x64xf32>
    %cst_92 = arith.constant 0.797884583 : f32
    %239 = vector.broadcast %cst_92 : f32 to vector<16x64xf32>
    %240 = arith.mulf %239, %238 : vector<16x64xf32>
    %241 = math.tanh %240 : vector<16x64xf32>
    %cst_93 = arith.constant 1.000000e+00 : f32
    %242 = vector.broadcast %cst_93 : f32 to vector<16x64xf32>
    %243 = arith.addf %242, %241 : vector<16x64xf32>
    %244 = arith.mulf %233, %243 : vector<16x64xf32>
    %245 = arith.truncf %244 : vector<16x64xf32> to vector<16x64xbf16>
    %c0_94 = arith.constant 0 : index
    %c0_95 = arith.constant 0 : index
    %c0_96 = arith.constant 0 : index
    %246 = vector.load %arg18[%c0_94, %c0_95, %c0_96] : memref<1x64x32xbf16, #tpu.memory_space<vmem>>, vector<1x64x32xbf16>
    %247 = vector.shape_cast %246 : vector<1x64x32xbf16> to vector<64x32xbf16>
    %cst_97 = arith.constant dense<0.000000e+00> : vector<16x32xf32>
    %248 = tpu.matmul %245, %247, %cst_97 {dimension_numbers = #tpu.dot_dimension_numbers<[1], [0], [0], [1], [0, 0, 1, 1], [], []>} : vector<16x64xbf16>, vector<64x32xbf16>, vector<16x32xf32> -> vector<16x32xf32>
    %c0_98 = arith.constant 0 : index
    %c0_99 = arith.constant 0 : index
    %c0_100 = arith.constant 0 : index
    %249 = vector.load %arg19[%c0_98, %c0_99, %c0_100] : memref<1x1x32xf32, #tpu.memory_space<vmem>>, vector<1x1x32xf32>
    %250 = vector.shape_cast %249 : vector<1x1x32xf32> to vector<1x32xf32>
    %251 = vector.broadcast %250 : vector<1x32xf32> to vector<16x32xf32>
    %252 = arith.addf %248, %251 : vector<16x32xf32>
    %253 = arith.addf %223, %252 : vector<16x32xf32>
    %c0_101 = arith.constant 0 : index
    %c0_102 = arith.constant 0 : index
    %c0_103 = arith.constant 0 : index
    %254 = vector.load %arg20[%c0_101, %c0_102, %c0_103] : memref<1x1x32xf32, #tpu.memory_space<vmem>>, vector<1x1x32xf32>
    %255 = vector.shape_cast %254 : vector<1x1x32xf32> to vector<1x32xf32>
    %c0_104 = arith.constant 0 : index
    %c0_105 = arith.constant 0 : index
    %c0_106 = arith.constant 0 : index
    %256 = vector.load %arg21[%c0_104, %c0_105, %c0_106] : memref<1x1x32xf32, #tpu.memory_space<vmem>>, vector<1x1x32xf32>
    %257 = vector.shape_cast %256 : vector<1x1x32xf32> to vector<1x32xf32>
    %cst_107 = arith.constant dense<0.000000e+00> : vector<16xf32>
    %258 = vector.multi_reduction <add>, %253, %cst_107 [1] : vector<16x32xf32> to vector<16xf32>
    %259 = vector.shape_cast %258 : vector<16xf32> to vector<16x1xf32>
    %cst_108 = arith.constant 3.200000e+01 : f32
    %260 = vector.broadcast %cst_108 : f32 to vector<16x1xf32>
    %261 = arith.divf %259, %260 : vector<16x1xf32>
    %262 = vector.broadcast %261 : vector<16x1xf32> to vector<16x32xf32>
    %263 = arith.subf %253, %262 : vector<16x32xf32>
    %264 = arith.mulf %263, %263 : vector<16x32xf32>
    %cst_109 = arith.constant dense<0.000000e+00> : vector<16xf32>
    %265 = vector.multi_reduction <add>, %264, %cst_109 [1] : vector<16x32xf32> to vector<16xf32>
    %266 = vector.shape_cast %265 : vector<16xf32> to vector<16x1xf32>
    %cst_110 = arith.constant 3.200000e+01 : f32
    %267 = vector.broadcast %cst_110 : f32 to vector<16x1xf32>
    %268 = arith.divf %266, %267 : vector<16x1xf32>
    %269 = vector.broadcast %261 : vector<16x1xf32> to vector<16x32xf32>
    %270 = arith.subf %253, %269 : vector<16x32xf32>
    %cst_111 = arith.constant 9.99999974E-6 : f32
    %271 = vector.broadcast %cst_111 : f32 to vector<16x1xf32>
    %272 = arith.addf %268, %271 : vector<16x1xf32>
    %273 = math.rsqrt %272 : vector<16x1xf32>
    %274 = vector.broadcast %273 : vector<16x1xf32> to vector<16x32xf32>
    %275 = arith.mulf %270, %274 : vector<16x32xf32>
    %276 = vector.broadcast %255 : vector<1x32xf32> to vector<16x32xf32>
    %277 = arith.mulf %275, %276 : vector<16x32xf32>
    %278 = vector.broadcast %257 : vector<1x32xf32> to vector<16x32xf32>
    %279 = arith.addf %277, %278 : vector<16x32xf32>
    %c0_112 = arith.constant 0 : index
    %c0_113 = arith.constant 0 : index
    %280 = vector.load %arg23[%c0_112, %c0_113] : memref<16x32xf32, #tpu.memory_space<vmem>>, vector<16x32xf32>
    tpu.vector_store %arg23[%c0_112, %c0_113], %279 {strides = array<i32>} : memref<16x32xf32, #tpu.memory_space<vmem>>, vector<16x32xf32>,
    %c1_i32 = arith.constant 1 : i32
    %281 = arith.cmpi eq, %arg1, %c1_i32 : i32
    %282 = arith.extui %281 : i1 to i32
    %c0_i32_114 = arith.constant 0 : i32
    %283 = arith.cmpi ne, %282, %c0_i32_114 : i32
    scf.if %283 {
      %284 = vector.extract_strided_slice %279 {offsets = [0, 0], sizes = [1, 32], strides = [1, 1]} : vector<16x32xf32> to vector<1x32xf32>
      %c0_115 = arith.constant 0 : index
      %c0_116 = arith.constant 0 : index
      %285 = vector.load %arg22[%c0_115, %c0_116] : memref<2x32xf32, #tpu.memory_space<vmem>>, vector<1x32xf32>
      tpu.vector_store %arg22[%c0_115, %c0_116], %284 {strides = array<i32>} : memref<2x32xf32, #tpu.memory_space<vmem>>, vector<1x32xf32>,
      %286 = vector.extract_strided_slice %279 {offsets = [8, 0], sizes = [1, 32], strides = [1, 1]} : vector<16x32xf32> to vector<1x32xf32>
      %c1_117 = arith.constant 1 : index
      %c0_118 = arith.constant 0 : index
      %287 = vector.load %arg22[%c1_117, %c0_118] : memref<2x32xf32, #tpu.memory_space<vmem>>, vector<1x32xf32>
      tpu.vector_store %arg22[%c1_117, %c0_118], %286 {strides = array<i32>} : memref<2x32xf32, #tpu.memory_space<vmem>>, vector<1x32xf32>,
    } else {
    }
    return
  }
  func.func @transform_0(%arg0: i32, %arg1: i32) -> (i32, i32) {
    %c0_i32 = arith.constant 0 : i32
    %c0_i32_0 = arith.constant 0 : i32
    return %arg0, %c0_i32 : i32, i32
  }
  func.func @transform_1(%arg0: i32, %arg1: i32) -> (i32, i32, i32) {
    %c0_i32 = arith.constant 0 : i32
    %c0_i32_0 = arith.constant 0 : i32
    %c0_i32_1 = arith.constant 0 : i32
    return %arg0, %c0_i32, %c0_i32_0 : i32, i32, i32
  }
  func.func @transform_2(%arg0: i32, %arg1: i32) -> (i32, i32) {
    %c0_i32 = arith.constant 0 : i32
    %c0_i32_0 = arith.constant 0 : i32
    %c0_i32_1 = arith.constant 0 : i32
    return %c0_i32, %c0_i32_0 : i32, i32
  }
  func.func @transform_3(%arg0: i32, %arg1: i32) -> (i32, i32) {
    %c0_i32 = arith.constant 0 : i32
    %c0_i32_0 = arith.constant 0 : i32
    %c0_i32_1 = arith.constant 0 : i32
    return %c0_i32, %c0_i32_0 : i32, i32
  }
  func.func @transform_4(%arg0: i32, %arg1: i32) -> (i32, i32, i32) {
    %c0_i32 = arith.constant 0 : i32
    %c0_i32_0 = arith.constant 0 : i32
    %c0_i32_1 = arith.constant 0 : i32
    return %arg1, %c0_i32, %c0_i32_0 : i32, i32, i32
  }
  func.func @transform_5(%arg0: i32, %arg1: i32) -> (i32, i32, i32) {
    %c0_i32 = arith.constant 0 : i32
    %c0_i32_0 = arith.constant 0 : i32
    %c0_i32_1 = arith.constant 0 : i32
    return %arg1, %c0_i32, %c0_i32_0 : i32, i32, i32
  }
  func.func @transform_6(%arg0: i32, %arg1: i32) -> (i32, i32, i32) {
    %c0_i32 = arith.constant 0 : i32
    %c0_i32_0 = arith.constant 0 : i32
    %c0_i32_1 = arith.constant 0 : i32
    return %arg1, %c0_i32, %c0_i32_0 : i32, i32, i32
  }
  func.func @transform_7(%arg0: i32, %arg1: i32) -> (i32, i32, i32) {
    %c0_i32 = arith.constant 0 : i32
    %c0_i32_0 = arith.constant 0 : i32
    %c0_i32_1 = arith.constant 0 : i32
    return %arg1, %c0_i32, %c0_i32_0 : i32, i32, i32
  }
  func.func @transform_8(%arg0: i32, %arg1: i32) -> (i32, i32, i32) {
    %c0_i32 = arith.constant 0 : i32
    %c0_i32_0 = arith.constant 0 : i32
    %c0_i32_1 = arith.constant 0 : i32
    return %arg1, %c0_i32, %c0_i32_0 : i32, i32, i32
  }
  func.func @transform_9(%arg0: i32, %arg1: i32) -> (i32, i32, i32) {
    %c0_i32 = arith.constant 0 : i32
    %c0_i32_0 = arith.constant 0 : i32
    %c0_i32_1 = arith.constant 0 : i32
    return %arg1, %c0_i32, %c0_i32_0 : i32, i32, i32
  }
  func.func @transform_10(%arg0: i32, %arg1: i32) -> (i32, i32, i32) {
    %c0_i32 = arith.constant 0 : i32
    %c0_i32_0 = arith.constant 0 : i32
    %c0_i32_1 = arith.constant 0 : i32
    return %arg1, %c0_i32, %c0_i32_0 : i32, i32, i32
  }
  func.func @transform_11(%arg0: i32, %arg1: i32) -> (i32, i32, i32) {
    %c0_i32 = arith.constant 0 : i32
    %c0_i32_0 = arith.constant 0 : i32
    %c0_i32_1 = arith.constant 0 : i32
    return %arg1, %c0_i32, %c0_i32_0 : i32, i32, i32
  }
  func.func @transform_12(%arg0: i32, %arg1: i32) -> (i32, i32, i32) {
    %c0_i32 = arith.constant 0 : i32
    %c0_i32_0 = arith.constant 0 : i32
    %c0_i32_1 = arith.constant 0 : i32
    return %arg1, %c0_i32, %c0_i32_0 : i32, i32, i32
  }
  func.func @transform_13(%arg0: i32, %arg1: i32) -> (i32, i32, i32) {
    %c0_i32 = arith.constant 0 : i32
    %c0_i32_0 = arith.constant 0 : i32
    %c0_i32_1 = arith.constant 0 : i32
    return %arg1, %c0_i32, %c0_i32_0 : i32, i32, i32
  }
  func.func @transform_14(%arg0: i32, %arg1: i32) -> (i32, i32, i32) {
    %c0_i32 = arith.constant 0 : i32
    %c0_i32_0 = arith.constant 0 : i32
    %c0_i32_1 = arith.constant 0 : i32
    return %arg1, %c0_i32, %c0_i32_0 : i32, i32, i32
  }
  func.func @transform_15(%arg0: i32, %arg1: i32) -> (i32, i32, i32) {
    %c0_i32 = arith.constant 0 : i32
    %c0_i32_0 = arith.constant 0 : i32
    %c0_i32_1 = arith.constant 0 : i32
    return %arg1, %c0_i32, %c0_i32_0 : i32, i32, i32
  }
  func.func @transform_16(%arg0: i32, %arg1: i32) -> (i32, i32, i32) {
    %c0_i32 = arith.constant 0 : i32
    %c0_i32_0 = arith.constant 0 : i32
    %c0_i32_1 = arith.constant 0 : i32
    return %arg1, %c0_i32, %c0_i32_0 : i32, i32, i32
  }
  func.func @transform_17(%arg0: i32, %arg1: i32) -> (i32, i32, i32) {
    %c0_i32 = arith.constant 0 : i32
    %c0_i32_0 = arith.constant 0 : i32
    %c0_i32_1 = arith.constant 0 : i32
    return %arg1, %c0_i32, %c0_i32_0 : i32, i32, i32
  }
  func.func @transform_18(%arg0: i32, %arg1: i32) -> (i32, i32, i32) {
    %c0_i32 = arith.constant 0 : i32
    %c0_i32_0 = arith.constant 0 : i32
    %c0_i32_1 = arith.constant 0 : i32
    return %arg1, %c0_i32, %c0_i32_0 : i32, i32, i32
  }
  func.func @transform_19(%arg0: i32, %arg1: i32) -> (i32, i32, i32) {
    %c0_i32 = arith.constant 0 : i32
    %c0_i32_0 = arith.constant 0 : i32
    %c0_i32_1 = arith.constant 0 : i32
    return %arg1, %c0_i32, %c0_i32_0 : i32, i32, i32
  }
  func.func @transform_20(%arg0: i32, %arg1: i32) -> (i32, i32) {
    %c0_i32 = arith.constant 0 : i32
    %c0_i32_0 = arith.constant 0 : i32
    return %arg0, %c0_i32 : i32, i32
  }
}

</mosaic_0001>

<bundles_post_ra>
// kernel: automodel_multimodal_forward.3
= control target key start
LH: loop header
LB: loop body
LE: loop exit
PB: predicated region body
PF: predicated region fallthrough
CT: control target
= control target key end

     0   :  { %v616_v0 = vmov 0   ;;  %v617_v2 = vmov 2   ;;  %v618_v3 = vmov 1   ;;  %vm112_vm0 = vcmask 1041408   ;;  %s830_s1 = inlined_call_operand.vmem [shape: f32[2,3], index: 1, kind: input, shape index: {}]   ;;  %s831_s2 = inlined_call_operand.vmem [shape: f32[3,256], index: 2, kind: input, shape index: {}]   ;;  %s832_s3 = inlined_call_operand.vmem [shape: f32[1,256], index: 3, kind: input, shape index: {}]   ;;  %s833_s7 = inlined_call_operand.vmem [shape: f32[1,32], index: 7, kind: input, shape index: {}]   ;;  %s834_s6 = inlined_call_operand.vmem [shape: bf16[256,32], index: 6, kind: input, shape index: {}]   ;;  %s835_s4 = inlined_call_operand.vmem [shape: f32[1,256], index: 4, kind: input, shape index: {}]   ;;  %s836_s5 = inlined_call_operand.vmem [shape: f32[1,256], index: 5, kind: input, shape index: {}]   ;;  %s837_s8 = inlined_call_operand.vmem [shape: f32[1,32], index: 8, kind: input, shape index: {}]   ;;  %s838_s9 = inlined_call_operand.vmem [shape: f32[1,32], index: 9, kind: input, shape index: {}]   ;;  %s839_s11 = inlined_call_operand.vmem [shape: f32[1,32], index: 11, kind: input, shape index: {}]   ;;  %s840_s10 = inlined_call_operand.vmem [shape: bf16[32,32], index: 10, kind: input, shape index: {}]   ;;  %s841_s0 = inlined_call_operand.vmem [shape: f32[2,32], index: 0, kind: input, shape index: {}]   ;;  %s842_s12 = inlined_call_operand.vmem [shape: f32[1,32], index: 12, kind: input, shape index: {}]   ;;  %s843_s13 = inlined_call_operand.vmem [shape: f32[1,32], index: 13, kind: input, shape index: {}]   ;;  %s844_s14 = inlined_call_operand.vmem [shape: f32[1,32], index: 14, kind: input, shape index: {}]   ;;  %s845_s15 = inlined_call_operand.<no memory space> [shape: f32[1,1], index: 15, kind: input, shape index: {}]   ;;  %s846_s16 = inlined_call_operand.vmem [shape: f32[2,1], index: 16, kind: output, shape index: {}]  }
   0x1   :  { %847 = sst [smem:[#allocation3_spill]] %s830_s1  ;;  %586 = vset.pattern.permute.xlu0 %v616_v0  ;;  %588 = vset.pattern.permute.xlu1 %v617_v2  ;;  %v57_v4 = vld [vmem:[%s831_s2] sm:$0x77]  ;;  %v619_v38 = vmov 256.0   ;;  %v570_v54 = vld [vmem:[%s834_s6 + $0x38] sm:$0xff]  ;;  %v569_v56 = vld [vmem:[%s834_s6 + $0x30] sm:$0xff] }
   0x2   :  { %s848_s23 = sld [smem:[#allocation3_spill]]  ;;  %v72_v5 = vperm.slane %v57_v4, 0  ;;  %v73_v6 = vperm.slane %v57_v4, 4  ;;  %v100_v8 = vperm.slane %v57_v4, 2  ;;  %v101_v9 = vperm.slane %v57_v4, 6  ;;  %v578_v55 = vld [vmem:[%s834_s6 + $0x78] sm:$0xff]  ;;  %315 = vmatpush.bf16.msra.mxu0 %v570_v54 }
   0x3   :  { %v58_v10 = vld [vmem:[%s832_s3] sm:$0x3]  ;;  %v86_v13 = vperm.slane %v57_v4, 1  ;;  %v87_v14 = vperm.slane %v57_v4, 5  ;;  %598 = vrcp.f32 %v619_v38  ;;  %328 = vmatpush.bf16.msra.mxu1 %v578_v55  ;;  %v577_v57 = vld [vmem:[%s834_s6 + $0x70] sm:$0xff]  ;;  %v568_v58 = vld [vmem:[%s834_s6 + $0x28] sm:$0xff] }
   0x4   :  { %v76_v11 = vperm.slane %v72_v5, 0  ;;  %v77_v12 = vperm.slane %v73_v6, 0  ;;  %v60_v15 = vperm.slane %v58_v10, 0  ;;  %v61_v16 = vperm.slane %v58_v10, 1  ;;  %v576_v59 = vld [vmem:[%s834_s6 + $0x68] sm:$0xff]  ;;  %v567_v60 = vld [vmem:[%s834_s6 + $0x20] sm:$0xff] }
   0x5   :  { %v104_v17 = vperm.slane %v100_v8, 2  ;;  %v105_v18 = vperm.slane %v101_v9, 2  ;;  %v90_v21 = vperm.slane %v86_v13, 1  ;;  %v91_v22 = vperm.slane %v87_v14, 1  ;;  %v575_v61 = vld [vmem:[%s834_s6 + $0x60] sm:$0xff]  ;;  %v566_v0 = vld [vmem:[%s834_s6 + $0x18] sm:$0xff] }
   0x6   :  { %316 = vmatpush.bf16.msra.mxu0 %v569_v56  ;;  %v573_v4 = vld [vmem:[%s834_s6 + $0x50] sm:$0xff]  ;;  %v564_v5 = vld [vmem:[%s834_s6 + $0x8] sm:$0xff]  ;;  %v563_v9 = vld [vmem:[%s834_s6] sm:$0xff]  ;;  %vm343_vm5 = vcmask 254976   ;;  %v620_v56 = vmov 32.0   ;;  %vm413_vm10 = vcmask 261120  }
   0x7   :  { %329 = vmatpush.bf16.msra.mxu1 %v577_v57  ;;  %v572_v6 = vld [vmem:[%s834_s6 + $0x48] sm:$0xff]  ;;  %v571_v10 = vld [vmem:[%s834_s6 + $0x40] sm:$0xff]  ;;  %vm484_vm14 = vcmask 1024  }
   0x8   :  { %v56_v1 = vld [vmem:[%s848_s23] sm:$0x3] }
   0x9   :  { %68 = vperm.xlu0 %586, %v56_v1   ;;  %97 = vperm.xlu1 %588, %v56_v1   ;;  %v599_v39 = vpop.eup %598  ;;  %v110_v13 = vld [vmem:[%s835_s4] sm:$0x3] }
   0xa   :  { %v119_v40 = vmul.f32 256.0, %v599_v39  ;;  %vm123_vm1 = vweird.f32 %v599_v39  ;;  %317 = vmatpush.bf16.msra.mxu0 %v568_v58 }
   0xb   :  { %330 = vmatpush.bf16.msra.mxu1 %v576_v59 }
   0xc   :  { %v120_v41 = vsub.f32 1.0, %v119_v40 }
   0xe   :  { %v121_v42 = vmul.f32 %v599_v39, %v120_v41  ;;  %318 = vmatpush.bf16.msra.mxu0 %v567_v60 }
   0xf   :  { %331 = vmatpush.bf16.msra.mxu1 %v575_v61 }
  0x10   :  { %v122_v43 = vadd.f32 %v599_v39, %v121_v42 }
  0x11   :  { %587 = vset.pattern.permute.xlu0 %v618_v3  ;;  %v565_v3 = vld [vmem:[%s834_s6 + $0x10] sm:$0xff] }
  0x12   :  { %83 = vperm.xlu0 %587, %v56_v1   ;;  %v124_v44 = vsel %vm123_vm1, %v599_v39, %v122_v43  ;;  %v574_v1 = vld [vmem:[%s834_s6 + $0x58] sm:$0xff]  ;;  %319 = vmatpush.bf16.msra.mxu0 %v566_v0 }
  0x13   :  { %332 = vmatpush.bf16.msra.mxu1 %v574_v1 }
  0x16   :  { %320 = vmatpush.bf16.msra.mxu0 %v565_v3 }
  0x17   :  { %333 = vmatpush.bf16.msra.mxu1 %v573_v4  ;;  %v580_v4 = vld [vmem:[%s840_s10 + $0x8] sm:$0xff] }
  0x18   :  { %423 = vmatpush.bf16.msra.mxu2 %v580_v4 }
  0x1a   :  { %589 = vset.pattern.permute.xlu0 %v617_v2  ;;  %321 = vmatpush.bf16.msra.mxu0 %v564_v5  ;;  %v579_v5 = vld [vmem:[%s840_s10] sm:$0xff] }
  0x1b   :  { %334 = vmatpush.bf16.msra.mxu1 %v572_v6 }
  0x1c   :  { %424 = vmatpush.bf16.msra.mxu2 %v579_v5 }
  0x1e   :  { %322 = vmatpush.bf16.msra.mxu0 %v563_v9 }
  0x1f   :  { %335 = vmatpush.bf16.msra.mxu1 %v571_v10 }
  0x7b   :  { %v69_v7 = vpop.permute.xlu0 %68  ;;  %v98_v23 = vpop.permute.xlu1 %97 }
  0x7c   :  { %v78_v19 = vmul.f32 %v76_v11, %v69_v7  ;;  %v79_v20 = vmul.f32 %v77_v12, %v69_v7  ;;  %v106_v25 = vmul.f32 %v104_v17, %v98_v23  ;;  %v107_v26 = vmul.f32 %v105_v18, %v98_v23 }
  0x7d   :  { %v150_v17 = vperm.slane %v110_v13, 0  ;;  %v151_v18 = vperm.slane %v110_v13, 1 }
  0x7e   :  { %v80_v27 = vadd.f32 %v78_v19, %v60_v15  ;;  %v81_v28 = vadd.f32 %v79_v20, %v61_v16  ;;  %v111_v15 = vld [vmem:[%s836_s5] sm:$0x3] }
  0x7f   :  { %v157_v20 = vperm.slane %v111_v15, 0 }
  0x84   :  { %v84_v24 = vpop.permute.xlu0 %83 }
  0x85   :  { %v92_v29 = vmul.f32 %v90_v21, %v84_v24  ;;  %v93_v30 = vmul.f32 %v91_v22, %v84_v24  ;;  %v158_v21 = vperm.slane %v111_v15, 1  ;;  %v591_v15 = vld [vmem:[%s837_s8] ss:$0 sm:$0xff] }
  0x87   :  { %v94_v31 = vadd.f32 %v92_v29, %v80_v27  ;;  %v95_v32 = vadd.f32 %v93_v30, %v81_v28 }
  0x89   :  { %v108_v33 = vadd.f32 %v106_v25, %v94_v31  ;;  %v109_v34 = vadd.f32 %v107_v26, %v95_v32 }
  0x8b   :  { %v113_v35 = vsel %vm112_vm0, %v108_v33, 0.0  ;;  %v114_v36 = vsel %vm112_vm0, %v109_v34, 0.0 }
  0x8c   :  { %v115_v37 = vadd.f32 %v114_v36, %v113_v35 }
  0x8e   :  { %116 = vadd.xlane.f32.xlu1 %v115_v37 }
 0x101   :  { %v117_v45 = vpop.xlane.xlu1 %116 }
 0x102   :  { %v125_v46 = vmul.f32 %v124_v44, %v117_v45 }
 0x104   :  { %v717_v47 = vsub.f32 %v108_v33, %v125_v46  ;;  %v719_v48 = vsub.f32 %v109_v34, %v125_v46 }
 0x106   :  { %v128_v49 = vmul.f32 %v717_v47, %v717_v47  ;;  %v129_v50 = vmul.f32 %v719_v48, %v719_v48 }
 0x108   :  { %v130_v51 = vsel %vm112_vm0, %v128_v49, 0.0  ;;  %v131_v52 = vsel %vm112_vm0, %v129_v50, 0.0 }
 0x109   :  { %v132_v53 = vadd.f32 %v131_v52, %v130_v51 }
 0x10b   :  { %133 = vadd.xlane.f32.xlu2 %v132_v53 }
 0x17e   :  { %v134_v62 = vpop.xlane.xlu2 %133 }
 0x17f   :  { %v135_v63 = vmul.f32 %v134_v62, %v124_v44 }
 0x181   :  { %v136_v2 = vadd.f32 1e-05, %v135_v63 }
 0x183   :  { %600 = vrsqrt.f32 %v136_v2  ;;  %vm143_vm3 = vweird.f32 %v136_v2 }
 0x189   :  { %v601_v7 = vpop.eup %600 }
 0x18a   :  { %v138_v8 = vmul.f32 %v601_v7, %v136_v2  ;;  %vm144_vm2 = vweird.f32 %v601_v7 }
 0x18b   :  { %vm145_vm4 = vmor %vm143_vm3, %vm144_vm2 }
 0x18c   :  { %v139_v11 = vmul.f32 %v601_v7, %v138_v8 }
 0x18e   :  { %v140_v12 = vmul.f32 0.5, %v139_v11 }
 0x190   :  { %v141_v14 = vsub.f32 1.5, %v140_v12 }
 0x192   :  { %v142_v16 = vmul.f32 %v601_v7, %v141_v14 }
 0x194   :  { %v146_v19 = vsel %vm145_vm4, %v601_v7, %v142_v16 }
 0x195   :  { %v147_v22 = vmul.f32 %v146_v19, %v717_v47  ;;  %v148_v23 = vmul.f32 %v146_v19, %v719_v48  ;;  %v590_v48 = vld [vmem:[%s833_s7] ss:$0 sm:$0xff] }
 0x197   :  { %v154_v24 = vmul.f32 %v150_v17, %v147_v22  ;;  %v155_v25 = vmul.f32 %v151_v18, %v148_v23  ;;  %v592_v17 = vld [vmem:[%s838_s9] ss:$0 sm:$0xff] }
 0x199   :  { %v161_v26 = vadd.f32 %v157_v20, %v154_v24  ;;  %v162_v27 = vadd.f32 %v158_v21, %v155_v25 }
 0x19b   :  { %v165_v28 = vmul.f32 0.044715, %v161_v26  ;;  %v166_v29 = vmul.f32 0.044715, %v162_v27  ;;  %v163_v40 = vmul.f32 0.5, %v161_v26  ;;  %v164_v42 = vmul.f32 0.5, %v162_v27 }
 0x19d   :  { %v167_v30 = vmul.f32 %v165_v28, %v161_v26  ;;  %v168_v31 = vmul.f32 %v166_v29, %v162_v27  ;;  %v390_v29 = vld [vmem:[%s841_s0] sm:$0x3] }
 0x19f   :  { %v169_v32 = vmul.f32 %v167_v30, %v161_v26  ;;  %v170_v33 = vmul.f32 %v168_v31, %v162_v27 }
 0x1a1   :  { %v171_v34 = vadd.f32 %v169_v32, %v161_v26  ;;  %v172_v35 = vadd.f32 %v170_v33, %v162_v27  ;;  %v593_v33 = vld [vmem:[%s839_s11] ss:$0 sm:$0xff] }
 0x1a3   :  { %v173_v36 = vmul.f32 0.7978846, %v171_v34  ;;  %v174_v37 = vmul.f32 0.7978846, %v172_v35 }
 0x1a5   :  { %602 = vtanh.f32 %v173_v36 }
 0x1a6   :  { %604 = vtanh.f32 %v174_v37 }
 0x1a7   :  { %606 = vrcp.f32 %v620_v56 }
 0x1ab   :  { %v603_v38 = vpop.eup %602 }
 0x1ac   :  { %v605_v39 = vpop.eup %604  ;;  %v177_v41 = vadd.f32 1.0, %v603_v38 }
 0x1ad   :  { %v178_v43 = vadd.f32 1.0, %v605_v39  ;;  %v607_v57 = vpop.eup %606 }
 0x1ae   :  { %v179_v44 = vmul.f32 %v177_v41, %v163_v40  ;;  %v348_v58 = vmul.f32 32.0, %v607_v57  ;;  %vm352_vm6 = vweird.f32 %v607_v57 }
 0x1af   :  { %v180_v45 = vmul.f32 %v178_v43, %v164_v42 }
 0x1b0   :  { %v181_v46 = vpack.c.bf16 %v179_v44, %v179_v44  ;;  %v349_v59 = vsub.f32 1.0, %v348_v58 }
 0x1b1   :  { %v182_v47 = vpack.c.bf16 %v180_v45, %v180_v45 }
 0x1b2   :  { %323 = vmatmul.bf16.vlgmr.msra.gmra.mxu0 %v181_v46  ;;  %v350_v60 = vmul.f32 %v607_v57, %v349_v59 }
 0x1b3   :  { %336 = vmatmul.bf16.vlgmr.msra.gmra.mxu1 %v182_v47 }
 0x1b4   :  { %v351_v61 = vadd.f32 %v607_v57, %v350_v60 }
 0x1b6   :  { %v787_v62 = vsel %vm352_vm6, %v607_v57, %v351_v61 }
 0x22f   :  { %v324_v49 = vpop.f32.mrf.mxu0 }
 0x230   :  { %v325_v50 = vadd.f32 %v590_v48, %v324_v49  ;;  %v337_v51 = vpop.f32.mrf.mxu1 }
 0x232   :  { %v338_v52 = vadd.f32 %v337_v51, %v325_v50 }
 0x234   :  { %v344_v53 = vsel %vm343_vm5, %v338_v52, 0.0 }
 0x235   :  { %345 = vadd.xlane.f32.xlu2 %v344_v53  ;;  %v21_v53 = vstv %s845_s15 }
 0x236   :  { %22 = vst [vmem:[#allocation2] sm:$0x1] %v21_v53 }
 0x237   :  { %v326_v54 = vpop.f32.mrf.mxu0 }
 0x238   :  { %v339_v55 = vpop.f32.mrf.mxu1 }
 0x239   :  { %v595_v55 = vld [vmem:[%s843_s13] ss:$0 sm:$0xff] }
 0x2a8   :  { %v346_v63 = vpop.xlane.xlu2 %345 }
 0x2a9   :  { %v354_v0 = vmul.f32 %v787_v62, %v346_v63 }
 0x2ab   :  { %v355_v1 = vsub.f32 %v338_v52, %v354_v0  ;;  %v594_v52 = vld [vmem:[%s842_s12] ss:$0 sm:$0xff] }
 0x2ad   :  { %v356_v2 = vmul.f32 %v355_v1, %v355_v1 }
 0x2af   :  { %v357_v3 = vsel %vm343_vm5, %v356_v2, 0.0 }
 0x2b0   :  { %358 = vadd.xlane.f32.xlu2 %v357_v3  ;;  %v596_v3 = vld [vmem:[%s844_s14] ss:$0 sm:$0xff] }
 0x323   :  { %v359_v6 = vpop.xlane.xlu2 %358 }
 0x324   :  { %v360_v7 = vmul.f32 %v359_v6, %v787_v62 }
 0x326   :  { %v361_v8 = vadd.f32 1e-05, %v360_v7  ;;  %v597_v7 = vld [vmem:[#allocation2] ss:$0 sm:$0xff] }
 0x328   :  { %608 = vrsqrt.f32 %v361_v8  ;;  %vm368_vm8 = vweird.f32 %v361_v8 }
 0x32e   :  { %v609_v9 = vpop.eup %608 }
 0x32f   :  { %v363_v10 = vmul.f32 %v609_v9, %v361_v8  ;;  %vm369_vm7 = vweird.f32 %v609_v9 }
 0x330   :  { %vm370_vm9 = vmor %vm368_vm8, %vm369_vm7 }
 0x331   :  { %v364_v11 = vmul.f32 %v609_v9, %v363_v10 }
 0x333   :  { %v365_v12 = vmul.f32 0.5, %v364_v11 }
 0x335   :  { %v366_v13 = vsub.f32 1.5, %v365_v12 }
 0x337   :  { %v367_v14 = vmul.f32 %v609_v9, %v366_v13 }
 0x339   :  { %v371_v16 = vsel %vm370_vm9, %v609_v9, %v367_v14 }
 0x33a   :  { %v372_v18 = vmul.f32 %v371_v16, %v355_v1 }
 0x33c   :  { %v376_v19 = vmul.f32 %v591_v15, %v372_v18 }
 0x33e   :  { %v380_v20 = vadd.f32 %v592_v17, %v376_v19 }
 0x340   :  { %v382_v21 = vmul.f32 0.044715, %v380_v20  ;;  %v381_v27 = vmul.f32 0.5, %v380_v20 }
 0x342   :  { %v383_v22 = vmul.f32 %v382_v21, %v380_v20 }
 0x344   :  { %v384_v23 = vmul.f32 %v383_v22, %v380_v20 }
 0x346   :  { %v385_v24 = vadd.f32 %v384_v23, %v380_v20 }
 0x348   :  { %v386_v25 = vmul.f32 0.7978846, %v385_v24 }
 0x34a   :  { %610 = vtanh.f32 %v386_v25 }
 0x350   :  { %v611_v26 = vpop.eup %610 }
 0x351   :  { %v388_v28 = vadd.f32 1.0, %v611_v26 }
 0x353   :  { %v389_v30 = vmul.f32 %v388_v28, %v381_v27 }
 0x355   :  { %v391_v31 = vadd.f32 %v390_v29, %v389_v30 }
 0x357   :  { %v392_v32 = vpack.c.bf16 %v391_v31, %v391_v31 }
 0x359   :  { %562 = vmatmul.msk.bf16.vlgmr.msra.gmra.mxu2 %vm413_vm10, %v392_v32 }
 0x3dc   :  { %v426_v34 = vpop.f32.mrf.mxu2 }
 0x3dd   :  { %v427_v35 = vadd.f32 %v593_v33, %v426_v34 }
 0x3df   :  { %v432_v36 = vsel %vm343_vm5, %v427_v35, 0.0 }
 0x3e0   :  { %433 = vadd.xlane.f32.xlu0 %v432_v36 }
 0x3e4   :  { %v428_v37 = vpop.f32.mrf.mxu2 }
 0x453   :  { %v434_v38 = vpop.xlane.xlu0 %433 }
 0x454   :  { %v435_v39 = vmul.f32 %v434_v38, %v787_v62 }
 0x456   :  { %v436_v40 = vsub.f32 %v427_v35, %v435_v39 }
 0x458   :  { %v437_v41 = vmul.f32 %v436_v40, %v436_v40 }
 0x45a   :  { %v438_v42 = vsel %vm343_vm5, %v437_v41, 0.0 }
 0x45b   :  { %439 = vadd.xlane.f32.xlu2 %v438_v42 }
 0x4ce   :  { %v440_v43 = vpop.xlane.xlu2 %439 }
 0x4cf   :  { %v441_v44 = vmul.f32 %v440_v43, %v787_v62 }
 0x4d1   :  { %v442_v45 = vadd.f32 1e-05, %v441_v44 }
 0x4d3   :  { %612 = vrsqrt.f32 %v442_v45  ;;  %vm449_vm12 = vweird.f32 %v442_v45 }
 0x4d9   :  { %v613_v46 = vpop.eup %612 }
 0x4da   :  { %v444_v47 = vmul.f32 %v613_v46, %v442_v45  ;;  %vm450_vm11 = vweird.f32 %v613_v46 }
 0x4db   :  { %vm451_vm13 = vmor %vm449_vm12, %vm450_vm11 }
 0x4dc   :  { %v445_v48 = vmul.f32 %v613_v46, %v444_v47 }
 0x4de   :  { %v446_v49 = vmul.f32 0.5, %v445_v48 }
 0x4e0   :  { %v447_v50 = vsub.f32 1.5, %v446_v49 }
 0x4e2   :  { %v448_v51 = vmul.f32 %v613_v46, %v447_v50 }
 0x4e4   :  { %v452_v54 = vsel %vm451_vm13, %v613_v46, %v448_v51 }
 0x4e5   :  { %v453_v56 = vmul.f32 %v452_v54, %v436_v40 }
 0x4e7   :  { %v457_v57 = vmul.f32 %v594_v52, %v453_v56 }
 0x4e9   :  { %v461_v58 = vadd.f32 %v595_v55, %v457_v57 }
 0x4eb   :  { %v463_v59 = vmul.f32 0.044715, %v461_v58  ;;  %v462_v1 = vmul.f32 0.5, %v461_v58 }
 0x4ed   :  { %v464_v60 = vmul.f32 %v463_v59, %v461_v58 }
 0x4ef   :  { %v465_v61 = vmul.f32 %v464_v60, %v461_v58 }
 0x4f1   :  { %v466_v62 = vadd.f32 %v465_v61, %v461_v58 }
 0x4f3   :  { %v467_v63 = vmul.f32 0.7978846, %v466_v62 }
 0x4f5   :  { %614 = vtanh.f32 %v467_v63 }
 0x4fb   :  { %v615_v0 = vpop.eup %614 }
 0x4fc   :  { %v469_v2 = vadd.f32 1.0, %v615_v0 }
 0x4fe   :  { %v470_v4 = vmul.f32 %v469_v2, %v462_v1 }
 0x500   :  { %v475_v5 = vmul.f32 %v596_v3, %v470_v4 }
 0x502   :  { %v476_v6 = vsel %vm343_vm5, %v475_v5, 0.0 }
 0x503   :  { %477 = vadd.xlane.f32.xlu2 %v476_v6 }
 0x576   :  { %v478_v8 = vpop.xlane.xlu2 %477 }
 0x577   :  { %v483_v9 = vadd.f32 %v597_v7, %v478_v8 }
 0x579   :  { %485 = vst.msk [vmem:[%s846_s16] sm:$0x3] %vm484_vm14, %v483_v9 }

// kernel: automodel_multimodal_forward.2
= control target key start
LH: loop header
LB: loop body
LE: loop exit
PB: predicated region body
PF: predicated region fallthrough
CT: control target
= control target key end

     0   :  { %s2557_s22 = smov 0   ;;  %s2559_s23 = smov 0   ;;  %s2895_s0 = inlined_call_operand.vmem [shape: bf16[16,32], index: 0, kind: input, shape index: {}]   ;;  %s2896_s1 = inlined_call_operand.vmem [shape: f32[2,1,8], index: 1, kind: input, shape index: {}]   ;;  %s2897_s2 = inlined_call_operand.vmem [shape: f32[1,32], index: 2, kind: input, shape index: {}]   ;;  %s2898_s3 = inlined_call_operand.vmem [shape: f32[1,32], index: 3, kind: input, shape index: {}]   ;;  %s2899_s4 = inlined_call_operand.vmem [shape: bf16[2,32,32], index: 4, kind: input, shape index: {}]   ;;  %s2900_s5 = inlined_call_operand.vmem [shape: f32[2,1,32], index: 5, kind: input, shape index: {}]   ;;  %s2901_s6 = inlined_call_operand.vmem [shape: bf16[2,32,32], index: 6, kind: input, shape index: {}]   ;;  %s2902_s7 = inlined_call_operand.vmem [shape: f32[2,1,32], index: 7, kind: input, shape index: {}]   ;;  %s2903_s8 = inlined_call_operand.vmem [shape: bf16[2,32,32], index: 8, kind: input, shape index: {}]   ;;  %s2904_s9 = inlined_call_operand.vmem [shape: f32[2,1,32], index: 9, kind: input, shape index: {}]   ;;  %s2905_s10 = inlined_call_operand.vmem [shape: bf16[2,32,32], index: 10, kind: input, shape index: {}]   ;;  %s2906_s11 = inlined_call_operand.vmem [shape: f32[2,1,32], index: 11, kind: input, shape index: {}]   ;;  %s2907_s12 = inlined_call_operand.vmem [shape: f32[2,1,32], index: 12, kind: input, shape index: {}]   ;;  %s2908_s13 = inlined_call_operand.vmem [shape: f32[2,1,32], index: 13, kind: input, shape index: {}]   ;;  %s2909_s14 = inlined_call_operand.vmem [shape: bf16[2,32,64], index: 14, kind: input, shape index: {}]   ;;  %s2910_s15 = inlined_call_operand.vmem [shape: f32[2,1,64], index: 15, kind: input, shape index: {}]   ;;  %s2911_s16 = inlined_call_operand.vmem [shape: bf16[2,64,32], index: 16, kind: input, shape index: {}]   ;;  %s2912_s17 = inlined_call_operand.vmem [shape: f32[2,1,32], index: 17, kind: input, shape index: {}]   ;;  %s2913_s18 = inlined_call_operand.vmem [shape: f32[2,1,32], index: 18, kind: input, shape index: {}]   ;;  %s2914_s19 = inlined_call_operand.vmem [shape: f32[2,1,32], index: 19, kind: input, shape index: {}]   ;;  %s2915_s20 = inlined_call_operand.vmem [shape: f32[2,32], index: 20, kind: output, shape index: {}]  }
   0x1   :  { %2921 = sst [smem:[#allocation8_spill]] %s2895_s0 }
   0x2   :  { %2922 = sst [smem:[#allocation9_spill]] %s2896_s1  ;;  %s2555_s1 = smov 0  }
   0x3   :  { %2923 = sst [smem:[#allocation10_spill]] %s2897_s2 }
   0x4   :  { %2924 = sst [smem:[#allocation11_spill]] %s2898_s3 }
   0x5   :  { %2925 = sst [smem:[#allocation12_spill]] %s2899_s4 }
   0x6   :  { %2926 = sst [smem:[#allocation13_spill]] %s2900_s5 }
   0x7   :  { %2927 = sst [smem:[#allocation14_spill]] %s2901_s6 }
   0x8   :  { %2928 = sst [smem:[#allocation15_spill]] %s2902_s7 }
   0x9   :  { %2929 = sst [smem:[#allocation16_spill]] %s2903_s8 }
   0xa   :  { %2930 = sst [smem:[#allocation17_spill]] %s2905_s10 }
   0xb   :  { %2931 = sst [smem:[#allocation18_spill]] %s2909_s14 }
   0xc   :  { %2932 = sst [smem:[#allocation19_spill]] %s2914_s19 }
   0xd   :  { %2933 = sst [smem:[#allocation20_spill]] %s2915_s20 }
   0xe LB: > { %2934 = sst [smem:[#allocation4_spill]] %s2432_s1  ;;  %s39_s24 = sadd.s32 1, %s2436_s22  ;;  %s2440_s23 = sphi %s2559_s23, %s30_s23   ;;  %s2436_s22 = sphi %s2557_s22, %s2965_s22   ;;  %s2432_s1 = sphi %s2555_s1, %s2964_s1  }
   0xf   : > { %2935 = sst [smem:[#allocation5_spill]] %s2436_s22  ;;  %p2171_p0 = scmp.ge.s32.totalorder %s2440_s23, 1 }
  0x10   : > { %2936 = sst [smem:[#allocation6_spill]] %s2440_s23  ;;  %p40_p1 = scmp.ge.s32.totalorder %s39_s24, 2 }
  0x11   : > { %p725_p2 = scmp.lt.s32.totalorder %s2440_s23, 3 }
  0x12   : > { %s2967_s24 = smov (%p40_p1, %s39_s24), 0 }
  0x13   : > { %2937 = sst [smem:[#allocation7_spill]] %s2967_s24  ;;  %p726_p3 = pnand %p2171_p0, %p725_p2 }
  0x14   : > { %p857_p4 = scmp.lt.s32.totalorder (!%p726_p3), %s2432_s1, 1  ;;  %s2939_s29 = sld [smem:[#allocation12_spill]] (!%p726_p3) }
  0x15   : > { %729 = sbr.rel (%p726_p3) target bundleno = 2644 (0xa54), region = 100  ;;  %s2940_s6 = sld [smem:[#allocation14_spill]] (!%p726_p3) }
  0x16   : > { %s2942_s8 = sld [smem:[#allocation16_spill]] (!%p726_p3) }
  0x17   : > { %s2943_s10 = sld [smem:[#allocation17_spill]] (!%p726_p3) }
  0x18   : > { %s2944_s14 = sld [smem:[#allocation18_spill]] (!%p726_p3) }
  0x19   : > { %s2945_s20 = sld [smem:[#allocation19_spill]] (!%p726_p3) }
  0x1a   : > { %s2577_s2 = scalar_select %p857_p4, %s2432_s1, 1 }
  0x1b   : > { %s2946_s4 = sld [smem:[#allocation4_spill]] }
  0x1c   : > { %s2280_s25 = sshll.u32 %s2577_s2, 4  ;;  %s910_s19 = scalar_lea.vmem %s2912_s17, %s2577_s2 }
  0x1d   : > { %s2587_s30 = scalar_lea.vmem %s2939_s29, %s2280_s25  ;;  %s2592_s24 = scalar_lea.vmem %s2940_s6, %s2280_s25 }
  0x1e   : > { %s2601_s3 = scalar_lea.vmem %s2942_s8, %s2280_s25  ;;  %s2610_s5 = scalar_lea.vmem %s2943_s10, %s2280_s25 }
  0x1f   : > { %s2627_s26 = scalar_lea.vmem %s2944_s14, %s2280_s25  ;;  %s2285_s10 = sshll.u32 %s2577_s2, 5 }
  0x20   : > { %s2637_s6 = scalar_lea.vmem %s2911_s16, %s2285_s10  ;;  %s913_s7 = scalar_lea.vmem %s2913_s18, %s2577_s2 }
  0x21   : > { %s916_s14 = scalar_lea.vmem %s2945_s20, %s2577_s2  ;;  %p2184_p5 = scmp.ne.s32.totalorder %s2946_s4, 0 }
  0x22   : > { %s2947_s0 = sld [smem:[#allocation8_spill]] (!%p2184_p5) }
  0x23   : > { %925 = sbr.rel (%p2184_p5) target bundleno = 320 (0x140), region = 104  ;;  %s2948_s20 = sld [smem:[#allocation10_spill]] (!%p2184_p5) }
  0x24   : > { %s2949_s22 = sld [smem:[#allocation11_spill]] (!%p2184_p5) }
  0x28   : > { %v2302_v0 = vld [vmem:[%s2947_s0] sm:$0xff]   ;;  %vm932_vm0 = vcmask 261120   ;;  %v2442_v5 = vmov 32.0  }
  0x29   : > { %v2303_v1 = vunpack.c.l.bf16 %v2302_v0  ;;  %v2304_v3 = vunpack.c.h.bf16 %v2302_v0  ;;  %2339 = vrcp.f32 %v2442_v5  ;;  %v2337_v36 = vld [vmem:[%s2948_s20] ss:$0 sm:$0xff] }
  0x2a   : > { %v2338_v39 = vld [vmem:[%s2949_s22] ss:$0 sm:$0xff] }
  0x2b   : > { %v933_v2 = vsel %vm932_vm0, %v2303_v1, 0.0  ;;  %v936_v4 = vsel %vm932_vm0, %v2304_v3, 0.0 }
  0x2c   : > { %934 = vadd.xlane.f32.xlu0 %v933_v2 }
  0x2f   : > { %v2340_v6 = vpop.eup %2339 }
  0x30   : > { %v940_v7 = vmul.f32 32.0, %v2340_v6  ;;  %vm944_vm1 = vweird.f32 %v2340_v6 }
  0x32   : > { %v941_v8 = vsub.f32 1.0, %v940_v7 }
  0x34   : > { %937 = vadd.xlane.f32.xlu0 %v936_v4  ;;  %v942_v9 = vmul.f32 %v2340_v6, %v941_v8 }
  0x36   : > { %v943_v10 = vadd.f32 %v2340_v6, %v942_v9 }
  0x38   : > { %v945_v11 = vsel %vm944_vm1, %v2340_v6, %v943_v10 }
  0x9f   : > { %v935_v12 = vpop.xlane.xlu0 %934 }
  0xa0   : > { %v946_v13 = vmul.f32 %v945_v11, %v935_v12 }
  0xa2   : > { %v948_v14 = vsub.f32 %v2303_v1, %v946_v13 }
  0xa4   : > { %v950_v15 = vmul.f32 %v948_v14, %v948_v14 }
  0xa6   : > { %v952_v16 = vsel %vm932_vm0, %v950_v15, 0.0 }
  0xa7   : > { %953 = vadd.xlane.f32.xlu1 %v952_v16  ;;  %v938_v17 = vpop.xlane.xlu0 %937 }
  0xa8   : > { %v947_v18 = vmul.f32 %v945_v11, %v938_v17 }
  0xaa   : > { %v949_v19 = vsub.f32 %v2304_v3, %v947_v18 }
  0xac   : > { %v951_v20 = vmul.f32 %v949_v19, %v949_v19 }
  0xae   : > { %v955_v21 = vsel %vm932_vm0, %v951_v20, 0.0 }
  0xaf   : > { %956 = vadd.xlane.f32.xlu1 %v955_v21 }
 0x11a   : > { %v954_v22 = vpop.xlane.xlu1 %953 }
 0x11b   : > { %v958_v23 = vmul.f32 %v954_v22, %v945_v11 }
 0x11d   : > { %v960_v24 = vadd.f32 1e-05, %v958_v23 }
 0x11f   : > { %2341 = vrsqrt.f32 %v960_v24  ;;  %vm968_vm3 = vweird.f32 %v960_v24 }
 0x122   : > { %v957_v25 = vpop.xlane.xlu1 %956 }
 0x123   : > { %v959_v26 = vmul.f32 %v957_v25, %v945_v11 }
 0x125   : > { %v2342_v27 = vpop.eup %2341  ;;  %v961_v28 = vadd.f32 1e-05, %v959_v26 }
 0x126   : > { %v963_v29 = vmul.f32 %v2342_v27, %v960_v24  ;;  %vm969_vm2 = vweird.f32 %v2342_v27 }
 0x127   : > { %2343 = vrsqrt.f32 %v961_v28  ;;  %vm970_vm4 = vmor %vm968_vm3, %vm969_vm2  ;;  %vm978_vm6 = vweird.f32 %v961_v28 }
 0x128   : > { %v964_v30 = vmul.f32 %v2342_v27, %v963_v29 }
 0x12a   : > { %v965_v31 = vmul.f32 0.5, %v964_v30 }
 0x12c   : > { %v966_v32 = vsub.f32 1.5, %v965_v31 }
 0x12d   : > { %v2344_v33 = vpop.eup %2343 }
 0x12e   : > { %v967_v34 = vmul.f32 %v2342_v27, %v966_v32  ;;  %v973_v35 = vmul.f32 %v2344_v33, %v961_v28  ;;  %vm979_vm5 = vweird.f32 %v2344_v33 }
 0x12f   : > { %vm980_vm7 = vmor %vm978_vm6, %vm979_vm5 }
 0x130   : > { %v971_v37 = vsel %vm970_vm4, %v2342_v27, %v967_v34  ;;  %v974_v38 = vmul.f32 %v2344_v33, %v973_v35 }
 0x131   : > { %v982_v40 = vmul.f32 %v971_v37, %v948_v14 }
 0x132   : > { %v975_v41 = vmul.f32 0.5, %v974_v38 }
 0x133   : > { %v987_v42 = vmul.f32 %v2337_v36, %v982_v40 }
 0x134   : > { %v976_v43 = vsub.f32 1.5, %v975_v41 }
 0x135   : > { %v992_v44 = vadd.f32 %v2338_v39, %v987_v42 }
 0x136   : > { %v977_v45 = vmul.f32 %v2344_v33, %v976_v43 }
 0x137   : > { %994 = vst.msk [vmem:[#allocation2] sm:$0xff] %vm932_vm0, %v992_v44 }
 0x138   : > { %v981_v46 = vsel %vm980_vm7, %v2344_v33, %v977_v45 }
 0x139   : > { %v983_v47 = vmul.f32 %v981_v46, %v949_v19 }
 0x13b   : > { %v988_v48 = vmul.f32 %v2337_v36, %v983_v47 }
 0x13d   : > { %v993_v49 = vadd.f32 %v2338_v39, %v988_v48 }
 0x13f   : > { %995 = vst.msk [vmem:[#allocation2 + $0x8] sm:$0xff] %vm932_vm0, %v993_v49 }
 0x140 PF: > { %v2289_v50 = vld [vmem:[%s2592_s24 + $0x8] sm:$0xff]  ;;  %v2288_v52 = vld [vmem:[%s2592_s24] sm:$0xff]  ;;  %vm1019_vm8 = vcmask 261120   ;;  %s2950_s23 = sld [smem:[#allocation15_spill]]  ;;  %vm1113_vm9 = vcmask 64512   ;;  %s2443_s29 = smov 112  }
 0x141   : > { %v2287_v51 = vld [vmem:[%s2587_s30 + $0x8] sm:$0xff]  ;;  %v2286_v53 = vld [vmem:[%s2587_s30] sm:$0xff]  ;;  %1063 = vmatpush.bf16.msra.mxu1 %v2289_v50  ;;  %s2952_s27 = sld [smem:[#allocation13_spill]]  ;;  %s2444_s0 = smov 120   ;;  %vm1155_vm10 = vcmask 1043456   ;;  %vm1371_vm11 = vcmask 130048  }
 0x142   : > { %v2671_v54 = vld [vmem:[#allocation2] sm:$0xff]  ;;  %1029 = vmatpush.bf16.msra.mxu0 %v2287_v51  ;;  %v2291_v56 = vld [vmem:[%s2601_s3 + $0x8] sm:$0xff]  ;;  %s2445_s8 = smov 104   ;;  %s2954_s28 = scalar_lea.vmem %s2904_s9, %s2577_s2  ;;  %vm1373_vm12 = vcmask 195584   ;;  %vm1376_vm13 = vcmask 257024   ;;  %vm1845_vm5 = vcmask 523264  }
 0x143   : > { %v2290_v57 = vld [vmem:[%s2601_s3] sm:$0xff]  ;;  %1097 = vmatpush.bf16.msra.mxu2 %v2291_v56  ;;  %s2955_s24 = sld [smem:[#allocation9_spill]]  ;;  %s2447_s25 = smov 8  }
 0x144   : > { %v2362_v3 = vld [vmem:[%s2954_s28] ss:$0 sm:$0xff]  ;;  %s2448_s3 = smov 24   ;;  %s2958_s20 = scalar_lea.vmem %s2908_s13, %s2577_s2 }
 0x145   : > { %1064 = vmatpush.bf16.msra.mxu1 %v2288_v52  ;;  %s2959_s22 = scalar_lea.vmem %s2910_s15, %s2577_s2 }
 0x146   : > { %v2673_v55 = vld [vmem:[#allocation2 + $0x8] sm:$0xff]  ;;  %1030 = vmatpush.bf16.msra.mxu0 %v2286_v53  ;;  %s2951_s1 = scalar_lea.vmem %s2950_s23, %s2577_s2 }
 0x147   : > { %v998_v58 = vpack.c.bf16 %v2673_v55, %v2671_v54  ;;  %1098 = vmatpush.bf16.msra.mxu2 %v2290_v57  ;;  %v2360_v59 = vld [vmem:[%s2951_s1] ss:$0 sm:$0xff]  ;;  %s2953_s4 = scalar_lea.vmem %s2952_s27, %s2577_s2  ;;  %s2446_s1 = smov 16  }
 0x148   : > { %v2361_v60 = vld [vmem:[%s2953_s4] ss:$0 sm:$0xff]  ;;  %s2956_s4 = scalar_lea.vmem %s2906_s11, %s2577_s2 }
 0x149   : > { %2202 = vmatmul.msk.bf16.vlgmr.msra.gmra.mxu1 %vm1019_vm8, %v998_v58  ;;  %2193 = vmatmul.msk.bf16.vlgmr.msra.gmra.mxu0 %vm1019_vm8, %v998_v58  ;;  %v2363_v18 = vld [vmem:[%s2955_s24] ss:$0 sm:$0xff]  ;;  %v2732_v33 = vld [vmem:[%s2955_s24 + $0x1] ss:$0 sm:$0xff] }
 0x14a   : > { %2211 = vmatmul.msk.bf16.vlgmr.msra.gmra.mxu2 %vm1019_vm8, %v998_v58 }
 0x1c6   : > { %v1066_v61 = vpop.f32.mrf.mxu1  ;;  %v1032_v62 = vpop.f32.mrf.mxu0 }
 0x1c7   : > { %v1067_v63 = vadd.f32 %v2360_v59, %v1066_v61  ;;  %v1033_v0 = vadd.f32 %v2361_v60, %v1032_v62 }
 0x1c9   : > { %v1105_v1 = vmul.f32 0.35355338, %v1033_v0  ;;  %1238 = vrot.lane.b32.xlu1 %v1067_v63, %s2443_s29  ;;  %1174 = vrot.lane.b32.xlu0 %v1067_v63, %s2444_s0 }
 0x1ca   : > { %2212 = vmatpush.xpose.msk.msrb.mxu2 %vm1113_vm9, %v1067_v63 }
 0x1cb   : > { %1236 = vrot.lane.b32.xlu2 %v1105_v1, %s2443_s29 }
 0x1cd   : > { %2213 = vmatmul.msk.f32.vlgmr.msrb.gmra.mxu2 %vm1113_vm9, %v1105_v1  ;;  %v1100_v2 = vpop.f32.mrf.mxu2 }
 0x1ce   : > { %v1101_v6 = vadd.f32 %v2362_v3, %v1100_v2  ;;  %v1068_v12 = vpop.f32.mrf.mxu1  ;;  %v1034_v16 = vpop.f32.mrf.mxu0 }
 0x1cf   : > { %v2711_v15 = vadd.f32 %v2360_v59, %v1068_v12  ;;  %v1035_v19 = vadd.f32 %v2361_v60, %v1034_v16 }
 0x1d0   : > { %v1107_v7 = vpack.c.bf16 %v1101_v6, %v1101_v6 }
 0x1d1   : > { %1299 = vrot.lane.b32.xlu1 %v1067_v63, %s2445_s8  ;;  %1172 = vrot.lane.b32.xlu0 %v1105_v1, %s2444_s0  ;;  %v2721_v22 = vmul.f32 0.35355338, %v1035_v19 }
 0x1d2   : > { %v1157_v8 = vsel %vm1155_vm10, %v1107_v7, 0  ;;  %v1213_v37 = vunpack.c.l.b16 %v1107_v7 }
 0x1d3   : > { %1297 = vrot.lane.b32.xlu2 %v1105_v1, %s2445_s8  ;;  %1166 = vmatpush.bf16.msra.mxu3 %v1157_v8 }
 0x1d4   : > { %v1214_v38 = vpack.c.b16 %v1213_v37, %v1213_v37 }
 0x1d5   : > { %v1102_v4 = vpop.f32.mrf.mxu2 }
 0x1d6   : > { %v2705_v5 = vadd.f32 %v2362_v3, %v1102_v4 }
 0x1d8   : > { %v2756_v7 = vpack.c.bf16 %v2705_v5, %v2705_v5 }
 0x225   : > { %v1237_v11 = vpop.permute.xlu2 %1236 }
 0x22d   : > { %v1298_v17 = vpop.permute.xlu2 %1297 }
 0x23b   : > { %v1239_v9 = vpop.permute.xlu1 %1238  ;;  %v1175_v10 = vpop.permute.xlu0 %1174 }
 0x23c   : > { %2215 = vmatpush.xpose.msk.msrb.mxu0 %vm1113_vm9, %v1175_v10  ;;  %2218 = vmatpush.xpose.msk.msra.mxu2 %vm1113_vm9, %v1239_v9  ;;  %v1425_v10 = vsel %vm1155_vm10, %v2756_v7, 0 }
 0x23f   : > { %2219 = vmatmul.msk.f32.vlgmr.msra.gmra.mxu2 %vm1113_vm9, %v1237_v11 }
 0x243   : > { %v1300_v13 = vpop.permute.xlu1 %1299  ;;  %v1173_v14 = vpop.permute.xlu0 %1172 }
 0x244   : > { %2216 = vmatmul.msk.f32.vlgmr.msrb.gmra.mxu0 %vm1113_vm9, %v1173_v14 }
 0x245   : > { %2221 = vmatpush.xpose.msk.msra.mxu0 %vm1113_vm9, %v1300_v13 }
 0x249   : > { %2225 = vmatpush.xpose.msk.msrb.mxu0 %vm1113_vm9, %v2711_v15 }
 0x24c   : > { %2222 = vmatmul.msk.f32.vlgmr.msra.gmra.mxu0 %vm1113_vm9, %v1298_v17 }
 0x250   : > { %v1137_v20 = vpop.f32.mrf.mxu2 }
 0x251   : > { %v1138_v21 = vadd.f32 %v2363_v18, %v1137_v20 }
 0x253   : > { %v1140_v23 = vsel %vm1113_vm9, %v1138_v21, -inf }
 0x254   : > { %1141 = vmax.xlane.f32.xlu0 %v1140_v23  ;;  %2226 = vmatmul.msk.f32.vlgmr.msrb.gmra.mxu0 %vm1113_vm9, %v2721_v22 }
 0x2c1   : > { %v1197_v24 = vpop.f32.mrf.mxu0 }
 0x2c2   : > { %v1198_v25 = vadd.f32 %v2363_v18, %v1197_v24  ;;  %v1261_v26 = vpop.f32.mrf.mxu2 }
 0x2c3   : > { %v1262_v27 = vadd.f32 %v2363_v18, %v1261_v26 }
 0x2c4   : > { %v1200_v28 = vsel %vm1113_vm9, %v1198_v25, -inf }
 0x2c5   : > { %1201 = vmax.xlane.f32.xlu1 %v1200_v28  ;;  %v1264_v29 = vsel %vm1113_vm9, %v1262_v27, -inf }
 0x2c6   : > { %1265 = vmax.xlane.f32.xlu2 %v1264_v29 }
 0x2c7   : > { %v1142_v39 = vpop.xlane.xlu0 %1141 }
 0x2c8   : > { %v1143_v40 = vsub.f32 %v1138_v21, %v1142_v39 }
 0x2c9   : > { %v1322_v30 = vpop.f32.mrf.mxu0 }
 0x2ca   : > { %v1323_v31 = vadd.f32 %v2363_v18, %v1322_v30  ;;  %v1144_v41 = vmul.f32 1.442695, %v1143_v40 }
 0x2cc   : > { %v1325_v32 = vsel %vm1113_vm9, %v1323_v31, -inf  ;;  %2372 = vpow2.f32 %v1144_v41 }
 0x2ce   : > { %1326 = vmax.xlane.f32.xlu2 %v1325_v32 }
 0x2d1   : > { %v1406_v34 = vpop.f32.mrf.mxu0 }
 0x2d2   : > { %v1407_v35 = vadd.f32 %v2732_v33, %v1406_v34  ;;  %v2373_v42 = vpop.eup %2372 }
 0x2d3   : > { %v1146_v43 = vsel %vm1113_vm9, %v2373_v42, 0.0 }
 0x2d4   : > { %v1409_v36 = vsel %vm1113_vm9, %v1407_v35, -inf }
 0x2d5   : > { %1410 = vmax.xlane.f32.xlu0 %v1409_v36 }
 0x2de   : > { %1276 = vrot.lane.b32.xlu1 %v1214_v38, %s2443_s29 }
 0x2e6   : > { %1337 = vrot.lane.b32.xlu2 %v1214_v38, %s2445_s8 }
 0x2e9   : > { %1215 = vrot.lane.b32.xlu0 %v1214_v38, %s2444_s0 }
 0x2f1   : > { %1506 = vrot.lane.b32.xlu0 %v2711_v15, %s2443_s29 }
 0x2f9   : > { %1504 = vrot.lane.b32.xlu0 %v2721_v22, %s2443_s29 }
 0x301   : > { %1442 = vrot.lane.b32.xlu0 %v2711_v15, %s2444_s0 }
 0x308   : > { %1147 = vadd.xlane.f32.xlu1 %v1146_v43 }
 0x309   : > { %1565 = vrot.lane.b32.xlu0 %v2721_v22, %s2445_s8 }
 0x338   : > { %v1202_v44 = vpop.xlane.xlu1 %1201 }
 0x339   : > { %v1203_v45 = vsub.f32 %v1198_v25, %v1202_v44  ;;  %v1266_v46 = vpop.xlane.xlu2 %1265 }
 0x33a   : > { %v1267_v48 = vsub.f32 %v1262_v27, %v1266_v46 }
 0x33b   : > { %v1204_v47 = vmul.f32 1.442695, %v1203_v45 }
 0x33c   : > { %v1268_v49 = vmul.f32 1.442695, %v1267_v48 }
 0x33d   : > { %2374 = vpow2.f32 %v1204_v47 }
 0x33e   : > { %2376 = vpow2.f32 %v1268_v49 }
 0x341   : > { %v1327_v50 = vpop.xlane.xlu2 %1326 }
 0x342   : > { %v1328_v51 = vsub.f32 %v1323_v31, %v1327_v50 }
 0x343   : > { %v2375_v52 = vpop.eup %2374 }
 0x344   : > { %v1329_v53 = vmul.f32 1.442695, %v1328_v51  ;;  %v1206_v56 = vsel %vm1113_vm9, %v2375_v52, 0.0  ;;  %v2377_v58 = vpop.eup %2376 }
 0x345   : > { %1207 = vadd.xlane.f32.xlu2 %v1206_v56  ;;  %v1270_v0 = vsel %vm1113_vm9, %v2377_v58, 0.0 }
 0x346   : > { %2378 = vpow2.f32 %v1329_v53 }
 0x348   : > { %v1411_v57 = vpop.xlane.xlu0 %1410 }
 0x349   : > { %v1412_v59 = vsub.f32 %v1407_v35, %v1411_v57  ;;  %v1338_v60 = vpop.permute.xlu2 %1337 }
 0x34a   : > { %v1343_v61 = vsel %vm1155_vm10, %v1338_v60, 0 }
 0x34b   : > { %v1413_v62 = vmul.f32 1.442695, %v1412_v59  ;;  %1352 = vmatpush.bf16.msrb.mxu2 %v1343_v61 }
 0x34c   : > { %v2379_v63 = vpop.eup %2378 }
 0x34d   : > { %2380 = vpow2.f32 %v1413_v62  ;;  %1271 = vadd.xlane.f32.xlu2 %v1270_v0  ;;  %v1331_v1 = vsel %vm1113_vm9, %v2379_v63, 0.0 }
 0x34e   : > { %1332 = vadd.xlane.f32.xlu1 %v1331_v1 }
 0x350   : > { %v1277_v2 = vpop.permute.xlu1 %1276 }
 0x351   : > { %v1282_v3 = vsel %vm1155_vm10, %v1277_v2, 0 }
 0x352   : > { %1291 = vmatpush.bf16.msrb.mxu3 %v1282_v3 }
 0x353   : > { %v2381_v4 = vpop.eup %2380 }
 0x354   : > { %v1415_v6 = vsel %vm1113_vm9, %v2381_v4, 0.0 }
 0x356   : > { %1416 = vadd.xlane.f32.xlu1 %v1415_v6 }
 0x35b   : > { %v1216_v8 = vpop.permute.xlu0 %1215 }
 0x35c   : > { %v1221_v9 = vsel %vm1155_vm10, %v1216_v8, 0 }
 0x35d   : > { %1230 = vmatpush.bf16.msrb.mxu1 %v1221_v9 }
 0x361   : > { %1434 = vmatpush.bf16.msra.mxu1 %v1425_v10  ;;  %v1481_v10 = vunpack.c.l.b16 %v2756_v7 }
 0x363   : > { %v1507_v11 = vpop.permute.xlu0 %1506 }
 0x364   : > { %2231 = vmatpush.xpose.msk.msra.mxu2 %vm1113_vm9, %v1507_v11  ;;  %v1482_v11 = vpack.c.b16 %v1481_v10, %v1481_v10 }
 0x365   : > { %1567 = vrot.lane.b32.xlu2 %v2711_v15, %s2445_s8 }
 0x36b   : > { %v1505_v5 = vpop.permute.xlu0 %1504 }
 0x36f   : > { %1440 = vrot.lane.b32.xlu1 %v2721_v22, %s2444_s0 }
 0x373   : > { %v1443_v17 = vpop.permute.xlu0 %1442 }
 0x37b   : > { %v1148_v12 = vpop.xlane.xlu1 %1147  ;;  %v1566_v36 = vpop.permute.xlu0 %1565 }
 0x37c   : > { %2382 = vrcp.f32 %v1148_v12 }
 0x382   : > { %v2383_v13 = vpop.eup %2382 }
 0x383   : > { %v1150_v14 = vmul.f32 %v2383_v13, %v2373_v42 }
 0x385   : > { %v1151_v16 = vpack.c.bf16 %v1150_v14, %v1150_v14 }
 0x387   : > { %2214 = vmatmul.msk.bf16.vlgmr.msra.gmra.mxu3 %vm1113_vm9, %v1151_v16 }
 0x388   : > { %2228 = vmatpush.xpose.msk.msra.mxu3 %vm1113_vm9, %v1443_v17 }
 0x3b8   : > { %v1208_v18 = vpop.xlane.xlu2 %1207 }
 0x3b9   : > { %2384 = vrcp.f32 %v1208_v18 }
 0x3bf   : > { %v2385_v19 = vpop.eup %2384 }
 0x3c0   : > { %v1210_v20 = vmul.f32 %v2385_v19, %v2375_v52  ;;  %v1272_v21 = vpop.xlane.xlu2 %1271 }
 0x3c1   : > { %2386 = vrcp.f32 %v1272_v21  ;;  %v1333_v15 = vpop.xlane.xlu1 %1332 }
 0x3c2   : > { %2388 = vrcp.f32 %v1333_v15  ;;  %v1211_v22 = vpack.c.bf16 %v1210_v20, %v1210_v20 }
 0x3c4   : > { %2217 = vmatmul.msk.bf16.vlgmr.msrb.gmra.mxu1 %vm1113_vm9, %v1211_v22 }
 0x3c7   : > { %v2387_v23 = vpop.eup %2386 }
 0x3c8   : > { %v2389_v24 = vpop.eup %2388  ;;  %v1274_v25 = vmul.f32 %v2387_v23, %v2377_v58  ;;  %v1568_v26 = vpop.permute.xlu2 %1567 }
 0x3c9   : > { %v1335_v27 = vmul.f32 %v2389_v24, %v2379_v63  ;;  %v1417_v28 = vpop.xlane.xlu1 %1416  ;;  %2234 = vmatpush.xpose.msk.msrb.mxu1 %vm1113_vm9, %v1568_v26 }
 0x3ca   : > { %2390 = vrcp.f32 %v1417_v28  ;;  %v1275_v29 = vpack.c.bf16 %v1274_v25, %v1274_v25 }
 0x3cb   : > { %v1336_v30 = vpack.c.bf16 %v1335_v27, %v1335_v27 }
 0x3cc   : > { %2220 = vmatmul.msk.bf16.vlgmr.msrb.gmra.mxu3 %vm1113_vm9, %v1275_v29 }
 0x3cd   : > { %2223 = vmatmul.msk.bf16.vlgmr.msrb.gmra.mxu2 %vm1113_vm9, %v1336_v30 }
 0x3d0   : > { %v2391_v31 = vpop.eup %2390 }
 0x3d1   : > { %v1419_v32 = vmul.f32 %v2391_v31, %v2381_v4 }
 0x3d3   : > { %v1420_v34 = vpack.c.bf16 %v1419_v32, %v1419_v32 }
 0x3d5   : > { %2227 = vmatmul.msk.bf16.vlgmr.msra.gmra.mxu1 %vm1113_vm9, %v1420_v34 }
 0x3dd   : > { %2232 = vmatmul.msk.f32.vlgmr.msra.gmra.mxu2 %vm1113_vm9, %v1505_v5 }
 0x3e1   : > { %v1441_v35 = vpop.permute.xlu1 %1440 }
 0x3e2   : > { %2229 = vmatmul.msk.f32.vlgmr.msra.gmra.mxu3 %vm1113_vm9, %v1441_v35 }
 0x3e5   : > { %2235 = vmatmul.msk.f32.vlgmr.msrb.gmra.mxu1 %vm1113_vm9, %v1566_v36 }
 0x40a   : > { %v2776_v37 = vpop.f32.mrf.mxu3 }
 0x412   : > { %v1170_v38 = vpop.f32.mrf.mxu3 }
 0x441   : > { %v2778_v39 = vpop.f32.mrf.mxu1 }
 0x449   : > { %v1234_v40 = vpop.f32.mrf.mxu1 }
 0x44a   : > { %v2294_v40 = vld [vmem:[%s2610_s5 + $0x8] sm:$0xff] }
 0x44f   : > { %v2780_v41 = vpop.f32.mrf.mxu3 }
 0x450   : > { %v2782_v42 = vpop.f32.mrf.mxu2 }
 0x452   : > { %v2784_v43 = vpop.f32.mrf.mxu1 }
 0x457   : > { %v1295_v44 = vpop.f32.mrf.mxu3 }
 0x458   : > { %v1356_v45 = vpop.f32.mrf.mxu2  ;;  %v2293_v44 = vld [vmem:[%s2610_s5] sm:$0xff] }
 0x45a   : > { %v1438_v46 = vpop.f32.mrf.mxu1 }
 0x460   : > { %v1529_v47 = vpop.f32.mrf.mxu2 }
 0x461   : > { %v1530_v48 = vadd.f32 %v2732_v33, %v1529_v47 }
 0x462   : > { %v1590_v49 = vpop.f32.mrf.mxu1 }
 0x463   : > { %v1591_v50 = vadd.f32 %v2732_v33, %v1590_v49  ;;  %v1532_v51 = vsel %vm1113_vm9, %v1530_v48, -inf }
 0x464   : > { %1533 = vmax.xlane.f32.xlu2 %v1532_v51 }
 0x465   : > { %v1465_v52 = vpop.f32.mrf.mxu3  ;;  %v1593_v53 = vsel %vm1113_vm9, %v1591_v50, -inf }
 0x466   : > { %v1466_v56 = vadd.f32 %v2732_v33, %v1465_v52  ;;  %1594 = vmax.xlane.f32.xlu1 %v1593_v53 }
 0x468   : > { %v1468_v57 = vsel %vm1113_vm9, %v1466_v56, -inf }
 0x469   : > { %1469 = vmax.xlane.f32.xlu0 %v1468_v57 }
 0x4d7   : > { %v1534_v58 = vpop.xlane.xlu2 %1533 }
 0x4d8   : > { %v1535_v59 = vsub.f32 %v1530_v48, %v1534_v58 }
 0x4d9   : > { %v1595_v60 = vpop.xlane.xlu1 %1594 }
 0x4da   : > { %v1536_v61 = vmul.f32 1.442695, %v1535_v59  ;;  %v1596_v62 = vsub.f32 %v1591_v50, %v1595_v60 }
 0x4dc   : > { %2392 = vpow2.f32 %v1536_v61  ;;  %v1597_v63 = vmul.f32 1.442695, %v1596_v62  ;;  %v1470_v0 = vpop.xlane.xlu0 %1469 }
 0x4dd   : > { %v1471_v1 = vsub.f32 %v1466_v56, %v1470_v0 }
 0x4de   : > { %2394 = vpow2.f32 %v1597_v63 }
 0x4df   : > { %v1472_v2 = vmul.f32 1.442695, %v1471_v1 }
 0x4e1   : > { %2396 = vpow2.f32 %v1472_v2 }
 0x4e2   : > { %v2393_v3 = vpop.eup %2392 }
 0x4e3   : > { %v1538_v4 = vsel %vm1113_vm9, %v2393_v3, 0.0 }
 0x4e4   : > { %v2395_v33 = vpop.eup %2394  ;;  %1539 = vadd.xlane.f32.xlu2 %v1538_v4 }
 0x4e5   : > { %v1599_v6 = vsel %vm1113_vm9, %v2395_v33, 0.0 }
 0x4e6   : > { %1600 = vadd.xlane.f32.xlu1 %v1599_v6 }
 0x4e7   : > { %v2397_v8 = vpop.eup %2396 }
 0x4e8   : > { %v1474_v9 = vsel %vm1113_vm9, %v2397_v8, 0.0 }
 0x4e9   : > { %1475 = vadd.xlane.f32.xlu0 %v1474_v9 }
 0x4fc   : > { %1544 = vrot.lane.b32.xlu2 %v1482_v11, %s2443_s29 }
 0x4fd   : > { %1483 = vrot.lane.b32.xlu0 %v1482_v11, %s2444_s0  ;;  %s2957_s0 = scalar_lea.vmem %s2907_s12, %s2577_s2 }
 0x4ff   : > { %1605 = vrot.lane.b32.xlu1 %v1482_v11, %s2445_s8 }
 0x557   : > { %v1540_v12 = vpop.xlane.xlu2 %1539 }
 0x558   : > { %2398 = vrcp.f32 %v1540_v12 }
 0x559   : > { %v1601_v19 = vpop.xlane.xlu1 %1600 }
 0x55c   : > { %v1476_v18 = vpop.xlane.xlu0 %1475 }
 0x55d   : > { %2400 = vrcp.f32 %v1476_v18 }
 0x55e   : > { %v2399_v5 = vpop.eup %2398  ;;  %2402 = vrcp.f32 %v1601_v19 }
 0x55f   : > { %v1542_v13 = vmul.f32 %v2399_v5, %v2393_v3  ;;  %v1545_v14 = vpop.permute.xlu2 %1544 }
 0x560   : > { %v1550_v16 = vsel %vm1155_vm10, %v1545_v14, 0 }
 0x561   : > { %v1543_v17 = vpack.c.bf16 %v1542_v13, %v1542_v13  ;;  %1559 = vmatpush.bf16.msrb.mxu3 %v1550_v16 }
 0x563   : > { %v2401_v7 = vpop.eup %2400 }
 0x564   : > { %2233 = vmatmul.msk.bf16.vlgmr.msrb.gmra.mxu3 %vm1113_vm9, %v1543_v17  ;;  %v2403_v20 = vpop.eup %2402  ;;  %v1478_v21 = vmul.f32 %v2401_v7, %v2397_v8 }
 0x565   : > { %v1603_v22 = vmul.f32 %v2403_v20, %v2395_v33  ;;  %v2449_v33 = vmov 32.0   ;;  %v2296_v20 = vld [vmem:[%s2627_s26 + $0x8] sm:$0xff] }
 0x566   : > { %v1479_v25 = vpack.c.bf16 %v1478_v21, %v1478_v21  ;;  %2404 = vrcp.f32 %v2449_v33  ;;  %1782 = vmatpush.bf16.msra.mxu1 %v2296_v20 }
 0x567   : > { %v1604_v27 = vpack.c.bf16 %v1603_v22, %v1603_v22  ;;  %v2295_v22 = vld [vmem:[%s2627_s26] sm:$0xff] }
 0x56a   : > { %1783 = vmatpush.bf16.msra.mxu1 %v2295_v22 }
 0x56c   : > { %v2405_v6 = vpop.eup %2404 }
 0x56d   : > { %v1698_v8 = vmul.f32 32.0, %v2405_v6  ;;  %vm1702_vm14 = vweird.f32 %v2405_v6 }
 0x56f   : > { %v1484_v15 = vpop.permute.xlu0 %1483  ;;  %v1699_v9 = vsub.f32 1.0, %v1698_v8 }
 0x570   : > { %v1489_v23 = vsel %vm1155_vm10, %v1484_v15, 0 }
 0x571   : > { %v1606_v24 = vpop.permute.xlu1 %1605  ;;  %1498 = vmatpush.bf16.msra.mxu0 %v1489_v23  ;;  %v1700_v10 = vmul.f32 %v2405_v6, %v1699_v9 }
 0x572   : > { %v1611_v26 = vsel %vm1155_vm10, %v1606_v24, 0 }
 0x573   : > { %1620 = vmatpush.bf16.msrb.mxu2 %v1611_v26  ;;  %v1701_v11 = vadd.f32 %v2405_v6, %v1700_v10 }
 0x574   : > { %2230 = vmatmul.msk.bf16.vlgmr.msra.gmra.mxu0 %vm1113_vm9, %v1479_v25 }
 0x575   : > { %1679 = vmatpush.bf16.msrb.mxu0 %v2294_v40 }
 0x576   : > { %2236 = vmatmul.msk.bf16.vlgmr.msrb.gmra.mxu2 %vm1113_vm9, %v1604_v27 }
 0x579   : > { %1680 = vmatpush.bf16.msrb.mxu0 %v2293_v44 }
 0x5e7   : > { %v1561_v28 = vpop.f32.mrf.mxu3 }
 0x5e8   : > { %v2350_v29 = vpack.i.bf16 %v1561_v28, %v2780_v41 }
 0x5ea   : > { %2351 = vrot.lane.b32.xlu0 %v2350_v29, %s2446_s1 }
 0x5ef   : > { %v1563_v30 = vpop.f32.mrf.mxu3 }
 0x5f1   : > { %v1500_v31 = vpop.f32.mrf.mxu0 }
 0x5f2   : > { %v2345_v32 = vpack.i.bf16 %v1500_v31, %v2778_v39 }
 0x5f4   : > { %2346 = vrot.lane.b32.xlu2 %v2345_v32, %s2447_s25 }
 0x5f9   : > { %v1502_v34 = vpop.f32.mrf.mxu0  ;;  %v1622_v35 = vpop.f32.mrf.mxu2 }
 0x5fa   : > { %v2355_v36 = vpack.i.bf16 %v1622_v35, %v2782_v42 }
 0x5fc   : > { %2356 = vrot.lane.b32.xlu1 %v2355_v36, %s2448_s3 }
 0x601   : > { %v1624_v38 = vpop.f32.mrf.mxu2 }
 0x64e   : > { %v2347_v41 = vpop.permute.xlu2 %2346 }
 0x64f   : > { %v2349_v46 = vunpack.i.h.bf16 %v2347_v41  ;;  %v2348_v47 = vunpack.i.l.bf16 %v2347_v41  ;;  %v2366_v41 = vld [vmem:[%s2957_s0] ss:$0 sm:$0xff] }
 0x651   : > { %v1638_v42 = vsel %vm1113_vm9, %v2784_v43, %v2349_v46  ;;  %v1370_v50 = vsel %vm1113_vm9, %v2776_v37, %v2348_v47  ;;  %v2365_v43 = vld [vmem:[%s2956_s4] ss:$0 sm:$0xff] }
 0x65c   : > { %v2352_v45 = vpop.permute.xlu0 %2351 }
 0x65d   : > { %v2354_v48 = vunpack.i.h.bf16 %v2352_v45  ;;  %v2353_v49 = vunpack.i.l.bf16 %v2352_v45 }
 0x65f   : > { %v1639_v53 = vsel %vm1371_vm11, %v1638_v42, %v2354_v48  ;;  %v1372_v56 = vsel %vm1371_vm11, %v1370_v50, %v2353_v49  ;;  %v2367_v48 = vld [vmem:[%s2958_s20] ss:$0 sm:$0xff] }
 0x66e   : > { %v2357_v39 = vpop.permute.xlu1 %2356 }
 0x66f   : > { %v2359_v51 = vunpack.i.h.bf16 %v2357_v39  ;;  %v2358_v52 = vunpack.i.l.bf16 %v2357_v39 }
 0x671   : > { %v1374_v57 = vsel %vm1373_vm12, %v1372_v56, %v2358_v52  ;;  %v1640_v58 = vsel %vm1373_vm12, %v1639_v53, %v2359_v51  ;;  %v2300_v53 = vld [vmem:[%s2637_s6 + $0x18] sm:$0xff]  ;;  %v2299_v56 = vld [vmem:[%s2637_s6 + $0x10] sm:$0xff] }
 0x672   : > { %v1375_v59 = vpack.c.bf16 %v1374_v57, %v1374_v57  ;;  %v1641_v60 = vpack.c.bf16 %v1640_v58, %v1640_v58  ;;  %1853 = vmatpush.bf16.msra.mxu3 %v2300_v53  ;;  %v2298_v57 = vld [vmem:[%s2637_s6 + $0x8] sm:$0xff]  ;;  %v2297_v58 = vld [vmem:[%s2637_s6] sm:$0xff] }
 0x673   : > { %v2371_v53 = vld [vmem:[%s916_s14] ss:$0 sm:$0xff] }
 0x674   : > { %1377 = vst.msk [vmem:[#allocation3] sm:$0xf] %vm1376_vm13, %v1375_v59  ;;  %v2368_v59 = vld [vmem:[%s2959_s22] ss:$0 sm:$0xff] }
 0x675   : > { %1642 = vst.msk [vmem:[#allocation3 + $0x4] sm:$0xf] %vm1376_vm13, %v1641_v60 }
 0x676   : > { %1854 = vmatpush.bf16.msra.mxu3 %v2299_v56 }
 0x67a   : > { %1855 = vmatpush.bf16.msra.mxu3 %v2298_v57 }
 0x67c   : > { %v2292_v61 = vld [vmem:[#allocation3] sm:$0xff] }
 0x67d   : > { %2249 = vmatmul.msk.bf16.vlgmr.msrb.gmra.mxu0 %vm1019_vm8, %v2292_v61 }
 0x67e   : > { %1856 = vmatpush.bf16.msra.mxu3 %v2297_v58 }
 0x6fa   : > { %v1682_v37 = vpop.f32.mrf.mxu0 }
 0x6fb   : > { %v1683_v62 = vadd.f32 %v2365_v43, %v1682_v37 }
 0x6fd   : > { %v1687_v63 = vadd.f32 %v1683_v62, %v2671_v54  ;;  %v2824_v54 = vsel %vm1702_vm14, %v2405_v6, %v1701_v11 }
 0x6ff   : > { %v1691_v0 = vsel %vm1019_vm8, %v1687_v63, 0.0 }
 0x700   : > { %1692 = vadd.xlane.f32.xlu2 %v1691_v0 }
 0x702   : > { %v1684_v1 = vpop.f32.mrf.mxu0 }
 0x703   : > { %v1685_v2 = vadd.f32 %v2365_v43, %v1684_v1 }
 0x705   : > { %v1688_v3 = vadd.f32 %v1685_v2, %v2673_v55 }
 0x707   : > { %v1694_v4 = vsel %vm1019_vm8, %v1688_v3, 0.0 }
 0x708   : > { %1695 = vadd.xlane.f32.xlu0 %v1694_v4 }
 0x773   : > { %v1693_v12 = vpop.xlane.xlu2 %1692 }
 0x774   : > { %v1704_v5 = vmul.f32 %v2824_v54, %v1693_v12 }
 0x776   : > { %v1706_v13 = vsub.f32 %v1687_v63, %v1704_v5 }
 0x778   : > { %v1708_v55 = vmul.f32 %v1706_v13, %v1706_v13 }
 0x77a   : > { %v1710_v14 = vsel %vm1019_vm8, %v1708_v55, 0.0 }
 0x77b   : > { %v1696_v16 = vpop.xlane.xlu0 %1695  ;;  %1711 = vadd.xlane.f32.xlu1 %v1710_v14 }
 0x77c   : > { %v1705_v17 = vmul.f32 %v2824_v54, %v1696_v16 }
 0x77e   : > { %v1707_v18 = vsub.f32 %v1688_v3, %v1705_v17  ;;  %v2369_v17 = vld [vmem:[%s910_s19] ss:$0 sm:$0xff] }
 0x780   : > { %v1709_v19 = vmul.f32 %v1707_v18, %v1707_v18 }
 0x782   : > { %v1713_v7 = vsel %vm1019_vm8, %v1709_v19, 0.0 }
 0x783   : > { %1714 = vadd.xlane.f32.xlu2 %v1713_v7 }
 0x7ee   : > { %v1712_v21 = vpop.xlane.xlu1 %1711 }
 0x7ef   : > { %v1716_v15 = vmul.f32 %v1712_v21, %v2824_v54 }
 0x7f1   : > { %v1718_v23 = vadd.f32 1e-05, %v1716_v15 }
 0x7f3   : > { %2406 = vrsqrt.f32 %v1718_v23  ;;  %vm1726_vm0 = vweird.f32 %v1718_v23 }
 0x7f6   : > { %v1715_v24 = vpop.xlane.xlu2 %1714 }
 0x7f7   : > { %v1717_v25 = vmul.f32 %v1715_v24, %v2824_v54 }
 0x7f9   : > { %v2407_v26 = vpop.eup %2406  ;;  %v1719_v27 = vadd.f32 1e-05, %v1717_v25 }
 0x7fa   : > { %v1721_v28 = vmul.f32 %v2407_v26, %v1718_v23  ;;  %vm1727_vm15 = vweird.f32 %v2407_v26 }
 0x7fb   : > { %2408 = vrsqrt.f32 %v1719_v27  ;;  %vm1728_vm1 = vmor %vm1726_vm0, %vm1727_vm15  ;;  %vm1736_vm3 = vweird.f32 %v1719_v27 }
 0x7fc   : > { %v1722_v29 = vmul.f32 %v2407_v26, %v1721_v28 }
 0x7fe   : > { %v1723_v30 = vmul.f32 0.5, %v1722_v29 }
 0x800   : > { %v1724_v31 = vsub.f32 1.5, %v1723_v30 }
 0x801   : > { %v2409_v32 = vpop.eup %2408 }
 0x802   : > { %v1725_v34 = vmul.f32 %v2407_v26, %v1724_v31  ;;  %v1731_v35 = vmul.f32 %v2409_v32, %v1719_v27  ;;  %vm1737_vm2 = vweird.f32 %v2409_v32 }
 0x803   : > { %vm1738_vm4 = vmor %vm1736_vm3, %vm1737_vm2 }
 0x804   : > { %v1732_v36 = vmul.f32 %v2409_v32, %v1731_v35  ;;  %v1729_v38 = vsel %vm1728_vm1, %v2407_v26, %v1725_v34 }
 0x805   : > { %v1740_v45 = vmul.f32 %v1729_v38, %v1706_v13 }
 0x806   : > { %v1733_v40 = vmul.f32 0.5, %v1732_v36 }
 0x807   : > { %v1745_v49 = vmul.f32 %v2366_v41, %v1740_v45 }
 0x808   : > { %v1734_v44 = vsub.f32 1.5, %v1733_v40 }
 0x809   : > { %v1750_v50 = vadd.f32 %v2367_v48, %v1745_v49 }
 0x80a   : > { %v1735_v46 = vmul.f32 %v2409_v32, %v1734_v44 }
 0x80c   : > { %v1739_v47 = vsel %vm1738_vm4, %v2409_v32, %v1735_v46 }
 0x80d   : > { %v1741_v39 = vmul.f32 %v1739_v47, %v1707_v18 }
 0x80f   : > { %v1746_v42 = vmul.f32 %v2366_v41, %v1741_v39 }
 0x811   : > { %v1751_v51 = vadd.f32 %v2367_v48, %v1746_v42 }
 0x813   : > { %v1752_v52 = vpack.c.bf16 %v1751_v51, %v1750_v50 }
 0x815   : > { %2258 = vmatmul.msk.bf16.vlgmr.msra.gmra.mxu1 %vm1019_vm8, %v1752_v52 }
 0x892   : > { %v1785_v60 = vpop.f32.mrf.mxu1 }
 0x893   : > { %v1786_v61 = vadd.f32 %v2368_v59, %v1785_v60 }
 0x895   : > { %v1792_v43 = vmul.f32 0.044715, %v1786_v61  ;;  %v1790_v12 = vmul.f32 0.5, %v1786_v61 }
 0x897   : > { %v1794_v37 = vmul.f32 %v1792_v43, %v1786_v61 }
 0x899   : > { %v1796_v62 = vmul.f32 %v1794_v37, %v1786_v61 }
 0x89a   : > { %v1787_v63 = vpop.f32.mrf.mxu1 }
 0x89b   : > { %v1798_v0 = vadd.f32 %v1796_v62, %v1786_v61  ;;  %v1788_v1 = vadd.f32 %v2368_v59, %v1787_v63 }
 0x89d   : > { %v1793_v2 = vmul.f32 0.044715, %v1788_v1  ;;  %v1800_v3 = vmul.f32 0.7978846, %v1798_v0  ;;  %v1791_v5 = vmul.f32 0.5, %v1788_v1 }
 0x89f   : > { %v1795_v4 = vmul.f32 %v1793_v2, %v1788_v1  ;;  %2410 = vtanh.f32 %v1800_v3 }
 0x8a1   : > { %v1797_v33 = vmul.f32 %v1795_v4, %v1788_v1 }
 0x8a3   : > { %v1799_v6 = vadd.f32 %v1797_v33, %v1788_v1 }
 0x8a5   : > { %v1801_v8 = vmul.f32 0.7978846, %v1799_v6  ;;  %v2411_v9 = vpop.eup %2410 }
 0x8a6   : > { %v1804_v10 = vadd.f32 1.0, %v2411_v9 }
 0x8a7   : > { %2412 = vtanh.f32 %v1801_v8 }
 0x8a8   : > { %v1806_v55 = vmul.f32 %v1804_v10, %v1790_v12 }
 0x8ad   : > { %v2413_v11 = vpop.eup %2412 }
 0x8ae   : > { %v1805_v13 = vadd.f32 1.0, %v2413_v11 }
 0x8b0   : > { %v1807_v14 = vmul.f32 %v1805_v13, %v1791_v5 }
 0x8b2   : > { %v1808_v16 = vpack.c.bf16 %v1807_v14, %v1806_v55 }
 0x8b4   : > { %2275 = vmatmul.msk.bf16.vlgmr.msra.gmra.mxu3 %vm1845_vm5, %v1808_v16 }
 0x937   : > { %v1858_v18 = vpop.f32.mrf.mxu3 }
 0x938   : > { %v1859_v19 = vadd.f32 %v2369_v17, %v1858_v18 }
 0x93a   : > { %v1863_v7 = vadd.f32 %v1859_v19, %v1750_v50 }
 0x93c   : > { %v1867_v20 = vsel %vm1019_vm8, %v1863_v7, 0.0 }
 0x93d   : > { %1868 = vadd.xlane.f32.xlu0 %v1867_v20 }
 0x93f   : > { %v1860_v21 = vpop.f32.mrf.mxu3 }
 0x940   : > { %v1861_v15 = vadd.f32 %v2369_v17, %v1860_v21 }
 0x942   : > { %v1864_v22 = vadd.f32 %v1861_v15, %v1751_v51  ;;  %v2370_v51 = vld [vmem:[%s913_s7] ss:$0 sm:$0xff]  ;;  %s2961_s7 = sld [smem:[#allocation4_spill]] }
 0x944   : > { %v1870_v23 = vsel %vm1019_vm8, %v1864_v22, 0.0 }
 0x945   : > { %1871 = vadd.xlane.f32.xlu1 %v1870_v23 }
 0x948   : > { %p2276_p6 = scmp.ne.s32.totalorder %s2961_s7, 1 }
 0x949   : > { %s2962_s5 = sld [smem:[#allocation20_spill]] (!%p2276_p6) }
 0x9b0   : > { %v1869_v24 = vpop.xlane.xlu0 %1868 }
 0x9b1   : > { %v1873_v25 = vmul.f32 %v1869_v24, %v2824_v54 }
 0x9b3   : > { %v1875_v26 = vsub.f32 %v1863_v7, %v1873_v25 }
 0x9b5   : > { %v1877_v27 = vmul.f32 %v1875_v26, %v1875_v26 }
 0x9b7   : > { %v1879_v28 = vsel %vm1019_vm8, %v1877_v27, 0.0 }
 0x9b8   : > { %v1872_v29 = vpop.xlane.xlu1 %1871  ;;  %1880 = vadd.xlane.f32.xlu2 %v1879_v28 }
 0x9b9   : > { %v1874_v30 = vmul.f32 %v1872_v29, %v2824_v54 }
 0x9bb   : > { %v1876_v31 = vsub.f32 %v1864_v22, %v1874_v30 }
 0x9bd   : > { %v1878_v32 = vmul.f32 %v1876_v31, %v1876_v31 }
 0x9bf   : > { %v1882_v34 = vsel %vm1019_vm8, %v1878_v32, 0.0 }
 0x9c0   : > { %1883 = vadd.xlane.f32.xlu0 %v1882_v34 }
 0xa2b   : > { %v1881_v35 = vpop.xlane.xlu2 %1880 }
 0xa2c   : > { %v1885_v36 = vmul.f32 %v1881_v35, %v2824_v54 }
 0xa2e   : > { %v1887_v38 = vadd.f32 1e-05, %v1885_v36 }
 0xa30   : > { %2414 = vrsqrt.f32 %v1887_v38  ;;  %vm1895_vm7 = vweird.f32 %v1887_v38 }
 0xa33   : > { %v1884_v40 = vpop.xlane.xlu0 %1883 }
 0xa34   : > { %v1886_v44 = vmul.f32 %v1884_v40, %v2824_v54 }
 0xa36   : > { %v2415_v41 = vpop.eup %2414  ;;  %v1888_v45 = vadd.f32 1e-05, %v1886_v44 }
 0xa37   : > { %v1890_v46 = vmul.f32 %v2415_v41, %v1887_v38  ;;  %vm1896_vm6 = vweird.f32 %v2415_v41 }
 0xa38   : > { %2416 = vrsqrt.f32 %v1888_v45  ;;  %vm1897_vm9 = vmor %vm1895_vm7, %vm1896_vm6  ;;  %vm1905_vm11 = vweird.f32 %v1888_v45 }
 0xa39   : > { %v1891_v47 = vmul.f32 %v2415_v41, %v1890_v46 }
 0xa3b   : > { %v1892_v48 = vmul.f32 0.5, %v1891_v47 }
 0xa3d   : > { %v1893_v49 = vsub.f32 1.5, %v1892_v48 }
 0xa3e   : > { %v2417_v39 = vpop.eup %2416 }
 0xa3f   : > { %v1894_v42 = vmul.f32 %v2415_v41, %v1893_v49  ;;  %v1900_v50 = vmul.f32 %v2417_v39, %v1888_v45  ;;  %vm1906_vm10 = vweird.f32 %v2417_v39 }
 0xa40   : > { %vm1907_vm12 = vmor %vm1905_vm11, %vm1906_vm10 }
 0xa41   : > { %v1898_v54 = vsel %vm1897_vm9, %v2415_v41, %v1894_v42  ;;  %v1901_v52 = vmul.f32 %v2417_v39, %v1900_v50 }
 0xa42   : > { %v1909_v56 = vmul.f32 %v1898_v54, %v1875_v26 }
 0xa43   : > { %v1902_v57 = vmul.f32 0.5, %v1901_v52 }
 0xa44   : > { %v1914_v58 = vmul.f32 %v2370_v51, %v1909_v56 }
 0xa45   : > { %v1903_v59 = vsub.f32 1.5, %v1902_v57 }
 0xa46   : > { %v1919_v60 = vadd.f32 %v2371_v53, %v1914_v58 }
 0xa47   : > { %v1904_v61 = vmul.f32 %v2417_v39, %v1903_v59 }
 0xa48   : > { %1921 = vst.msk [vmem:[#allocation2] sm:$0xff] %vm1019_vm8, %v1919_v60 }
 0xa49   : > { %v1908_v43 = vsel %vm1907_vm12, %v2417_v39, %v1904_v61 }
 0xa4a   : > { %v1910_v37 = vmul.f32 %v1908_v43, %v1876_v31 }
 0xa4c   : > { %v1915_v62 = vmul.f32 %v2370_v51, %v1910_v37  ;;  %1926 = sbr.rel (%p2276_p6) target bundleno = 2644 (0xa54), region = 108 }
 0xa4e   : > { %v1920_v63 = vadd.f32 %v2371_v53, %v1915_v62 }
 0xa50   : > { %1922 = vst.msk [vmem:[#allocation2 + $0x8] sm:$0xff] %vm1019_vm8, %v1920_v63 }
 0xa51   : > { %vm1927_vm13 = vcmask 253952  }
 0xa52   : > { %1928 = vst.msk [vmem:[%s2962_s5] sm:$0x1] %vm1927_vm13, %v1919_v60 }
 0xa53   : > { %1929 = vst.msk [vmem:[%s2962_s5 + $0x1] sm:$0x1] %vm1927_vm13, %v1920_v63 }
 0xa54 PF: > { %s2963_s26 = sld [smem:[#allocation6_spill]] }
 0xa55   : > { %s2964_s1 = sld [smem:[#allocation5_spill]] }
 0xa56   : > { %s2965_s22 = sld [smem:[#allocation7_spill]] }
 0xa5a   : > { %s30_s23 = sadd.s32 1, %s2963_s26  }
 0xa5b   : > { %p27_p7 = scmp.ge.s32.totalorder %s30_s23, 4  }
 0xa5d   :  { %29 = sbr.rel (!%p27_p7) target bundleno = 14 (0xe), region = 190 }

</bundles_post_ra>
